<compile_context>
chip_gen: v7x
topology: tpu7x:2x2x1
jax: 0.10.0
libtpu: 0.0.40
codegen_flags: <defaults>
</compile_context>

<pallas_src>
import math
import numpy as np
import jax
import jax.numpy as jnp
from jax.experimental import pallas as pl
from jax.experimental.pallas import tpu as pltpu


# ----------------------------------------------------------------------------
# Pallas kernel: one time chunk per grid step, recurrence as unrolled fori_loop.
#   w_ref   : VMEM f32 [T, L, bs, 1]  per-offset pooling weights for this chunk
#   gx_ref  : VMEM f32 [T, bs, 4H]    hoisted x @ W_ih^T + (b_ih + b_hh)
#   whh_ref : VMEM f32 [H, 4H]        fused recurrent weights (transposed)
#   out_ref : VMEM f32 [T, bs, H]     hidden-state output for this chunk
#   h_win   : VMEM f32 [L, bs, H]     ring buffer: last L hidden states
#   c_win   : VMEM f32 [L, bs, H]     ring buffer: last L cell states
# ----------------------------------------------------------------------------
def lattice_lstm_kernel(w_ref, gx_ref, whh_ref, out_ref, h_win, c_win):
    T, bs, H = out_ref.shape
    L = h_win.shape[0]
    chunk = pl.program_id(1)

    # Zero the lookback window once per batch tile: every zero-weight padding
    # slot (and step 0, whose initial state is h = c = 0) then reads only
    # zeros, never uninitialized VMEM.  Do NOT remove this invariant.
    @pl.when(chunk == 0)
    def _():
        h_win[...] = jnp.zeros_like(h_win)
        c_win[...] = jnp.zeros_like(c_win)

    whh = whh_ref[...]                                   # [H, 4H], lives in vregs

    def step(tl, carry):
        t = chunk * T + tl                               # global timestep

        # ---- lattice pooling: L full-width FMAs over the history window ----
        w_all = w_ref[tl]                                # [L, bs, 1]
        h = jnp.zeros((bs, H), jnp.float32)
        c = jnp.zeros((bs, H), jnp.float32)
        for l in range(L):                               # L is small & static
            p = jnp.maximum(t - 1 - l, 0)                # predecessor step
            slot = p % L                                 # (weight 0 when invalid)
            w = w_all[l]                                 # [bs, 1] lane-broadcast
            h = h + w * h_win[slot]
            c = c + w * c_win[slot]

        # ---- fused LSTM cell: one MXU matmul, gates sliced from [bs, 4H] ----
        gates = gx_ref[tl] + jnp.dot(h, whh, preferred_element_type=jnp.float32)
        i_g = jax.nn.sigmoid(gates[:, 0 * H:1 * H])
        f_g = jax.nn.sigmoid(gates[:, 1 * H:2 * H])
        g_g = jnp.tanh(gates[:, 2 * H:3 * H])
        o_g = jax.nn.sigmoid(gates[:, 3 * H:4 * H])

        c_new = f_g * c + i_g * g_g
        h_new = o_g * jnp.tanh(c_new)

        out_ref[tl] = h_new
        slot_w = t % L                                   # evict the oldest row
        h_win[slot_w] = h_new
        c_win[slot_w] = c_new
        return carry

    jax.lax.fori_loop(0, T, step, 0, unroll=True)


# ----------------------------------------------------------------------------
# Wrapper: layout plumbing + hoisted input projection + pallas_call.
# ----------------------------------------------------------------------------
def lattice_rnn_pallas(x_bsd, w_dense, W_ih, W_hh, b_ih, b_hh, *, time_chunk=4):
    """x_bsd: [bs, sl, D] (batch_first); w_dense: [sl, L, bs, 1].
    Returns [bs, sl, H]."""
    bs, sl, D = x_bsd.shape
    H = W_hh.shape[1]
    L = w_dense.shape[1]

    # Fused + transposed parameters (PyTorch gate order i, f, g, o preserved).
    wih = W_ih.astype(jnp.float32).T                      # [D, 4H]
    whh = W_hh.astype(jnp.float32).T                      # [H, 4H]
    bias = (b_ih + b_hh).astype(jnp.float32)              # [4H]

    # Hoisted input projection: one batched GEMM (default matmul precision).
    x_tbd = jnp.transpose(x_bsd, (1, 0, 2)).astype(jnp.float32)   # [sl, bs, D]
    gx = jnp.einsum('sbd,dh->sbh', x_tbd, wih) + bias             # [sl, bs, 4H]

    # Pad the time axis to a multiple of the chunk size; padded steps have
    # zero weights / zero gx and are sliced off the output.
    T = max(1, min(time_chunk, sl))
    sl_pad = T * math.ceil(sl / T)
    if sl_pad != sl:
        gx = jnp.pad(gx, ((0, sl_pad - sl), (0, 0), (0, 0)))
        w_dense = jnp.pad(w_dense, ((0, sl_pad - sl), (0, 0), (0, 0), (0, 0)))
    w_dense = w_dense.astype(jnp.float32)

    # Single batch tile at these shapes; the leading "parallel" axis is where
    # a v7x dual-TensorCore batch split plugs in (a real split needs bs_tile
    # to be a multiple of 8 for the (8, 128) block constraint).
    bs_tile = bs
    grid = (bs // bs_tile, sl_pad // T)

    out_tbh = pl.pallas_call(
        lattice_lstm_kernel,
        out_shape=jax.ShapeDtypeStruct((sl_pad, bs, H), jnp.float32),
        grid_spec=pltpu.PrefetchScalarGridSpec(
            num_scalar_prefetch=0,
            grid=grid,
            in_specs=[
                pl.BlockSpec((T, L, bs_tile, 1), lambda b, c: (c, 0, b, 0)),
                pl.BlockSpec((T, bs_tile, 4 * H), lambda b, c: (c, b, 0)),
                pl.BlockSpec((H, 4 * H), lambda b, c: (0, 0)),
            ],
            out_specs=pl.BlockSpec((T, bs_tile, H), lambda b, c: (c, b, 0)),
            scratch_shapes=[
                pltpu.VMEM((L, bs_tile, H), jnp.float32),   # h lookback window
                pltpu.VMEM((L, bs_tile, H), jnp.float32),   # c lookback window
            ],
        ),
        compiler_params=pltpu.CompilerParams(
            dimension_semantics=("parallel", "arbitrary"),
        ),
    )(w_dense, gx, whh)

    return jnp.transpose(out_tbh[:sl], (1, 0, 2))             # [bs, sl, H]


# ----------------------------------------------------------------------------
# Host glue: compile the ragged `prevs` structure into dense per-offset
# pooling weights w[t, l, b] with predecessor step = t - 1 - l.  Semantics
# match the PyTorch module exactly (single predecessor => plain copy ignoring
# the marginal; weighted-sum / sum / best otherwise).
# ----------------------------------------------------------------------------
def build_dense_prevs(prevs, bs, sl, combine_method="weighted-sum"):
    L = 1
    for b in range(bs):
        for t in range(1, sl):
            for idx, _ in prevs[b][t]:
                assert 0 <= idx < t, f"non-causal predecessor {idx} at step {t}"
                L = max(L, t - idx)
    w = np.zeros((sl, L, bs), np.float32)
    for b in range(bs):
        for t in range(1, sl):
            plist = prevs[b][t]
            if len(plist) == 1:
                idx, _ = plist[0]
                w[t, t - 1 - idx, b] += 1.0              # copy, ignore marginal
            elif combine_method == "weighted-sum":
                for idx, m in plist:
                    w[t, t - 1 - idx, b] += float(m)
            elif combine_method == "sum":
                for idx, _ in plist:
                    w[t, t - 1 - idx, b] += 1.0
            elif combine_method == "best":
                bi, _ = sorted(plist, key=lambda p: p[1], reverse=True)[0]
                w[t, t - 1 - bi, b] += 1.0
            else:
                raise ValueError(combine_method)
    return jnp.asarray(w[..., None]), L                  # [sl, L, bs, 1]


# ----------------------------------------------------------------------------
# Pure-numpy reference mirroring the PyTorch module semantics exactly.
# ----------------------------------------------------------------------------
def lattice_rnn_ref(x, prevs, W_ih, W_hh, b_ih, b_hh, combine_method="weighted-sum"):
    x = np.asarray(x, dtype=np.float32)
    W_ih = np.asarray(W_ih); W_hh = np.asarray(W_hh)
    b_ih = np.asarray(b_ih); b_hh = np.asarray(b_hh)
    bs, sl, _ = x.shape
    H = W_hh.shape[1]

    def sigmoid(z):
        return 1.0 / (1.0 + np.exp(-z))

    hs_hist, cs_hist, outputs = [], [], []
    h = np.zeros((bs, H), np.float32)
    c = np.zeros((bs, H), np.float32)
    for t in range(sl):
        if t != 0:
            h_rows, c_rows = [], []
            for b in range(bs):
                plist = prevs[b][t]
                if len(plist) == 1:
                    i0, _ = plist[0]
                    h_rows.append(hs_hist[i0][b]); c_rows.append(cs_hist[i0][b])
                elif combine_method in ("weighted-sum", "sum"):
                    hh = np.zeros(H, np.float32); cc = np.zeros(H, np.float32)
                    for i0, m in plist:
                        wgt = m if combine_method == "weighted-sum" else 1.0
                        hh += wgt * hs_hist[i0][b]; cc += wgt * cs_hist[i0][b]
                    h_rows.append(hh); c_rows.append(cc)
                else:  # best
                    bi, _ = sorted(plist, key=lambda p: p[1], reverse=True)[0]
                    h_rows.append(hs_hist[bi][b]); c_rows.append(cs_hist[bi][b])
            h = np.stack(h_rows); c = np.stack(c_rows)
        gates = x[:, t] @ W_ih.T + h @ W_hh.T + b_ih + b_hh
        i = sigmoid(gates[:, 0 * H:1 * H]); f = sigmoid(gates[:, 1 * H:2 * H])
        g = np.tanh(gates[:, 2 * H:3 * H]); o = sigmoid(gates[:, 3 * H:4 * H])
        c = f * c + i * g
        h = o * np.tanh(c)
        hs_hist.append(h.copy()); cs_hist.append(c.copy())
        outputs.append(h.copy())
    return np.stack(outputs, axis=1)                      # [bs, sl, H]


if __name__ == "__main__":
    bs, sl, D, H = 2, 8, 16, 32
    combine_method = "weighted-sum"

    key = jax.random.PRNGKey(0)
    kx, k1, k2, k3, k4 = jax.random.split(key, 5)

    # Inputs.
    x = jax.random.normal(kx, (bs, sl, D), dtype=jnp.float32)

    # Deterministic lattice connectivity: prevs[b][t] = list of (idx, marginal).
    prevs = []
    for b in range(bs):
        per_b = [[]]                                      # t = 0 unused
        for t in range(1, sl):
            if t == 1 or (t + b) % 3 == 0:
                per_b.append([(t - 1, 0.7)])              # single predecessor
            else:
                per_b.append([(t - 1, 0.6), (max(t - 2, 0), 0.4)])
        prevs.append(per_b)

    # Deterministic LSTM parameters (PyTorch-style uniform(-1/sqrt(H), 1/sqrt(H))).
    kinit = 1.0 / np.sqrt(H)
    W_ih = jax.random.uniform(k1, (4 * H, D), minval=-kinit, maxval=kinit, dtype=jnp.float32)
    W_hh = jax.random.uniform(k2, (4 * H, H), minval=-kinit, maxval=kinit, dtype=jnp.float32)
    b_ih = jax.random.uniform(k3, (4 * H,), minval=-kinit, maxval=kinit, dtype=jnp.float32)
    b_hh = jax.random.uniform(k4, (4 * H,), minval=-kinit, maxval=kinit, dtype=jnp.float32)

    # Dense per-lookback-offset pooling weights from the ragged prevs structure.
    w_dense, L = build_dense_prevs(prevs, bs, sl, combine_method)

    out = lattice_rnn_pallas(x, w_dense, W_ih, W_hh, b_ih, b_hh, time_chunk=4)
    out = jax.block_until_ready(out)

    ref = lattice_rnn_ref(x, prevs, W_ih, W_hh, b_ih, b_hh, combine_method)
    # Tolerance accounts for default (bf16-pass) matmul precision on the
    # hoisted input projection; outputs are O(1) post-tanh, so 5e-3 is ample.
    np.testing.assert_allclose(np.asarray(out), ref, rtol=5e-3, atol=5e-3)

    print("KERNEL_OK")
</pallas_src>

<mosaic_0001>
module attributes {stable_mosaic.version = 11 : i64} {
  func.func @lattice_lstm_kernel(%arg0: i32, %arg1: i32, %arg2: memref<4x2x2x1xf32, #tpu.memory_space<vmem>>, %arg3: memref<4x2x128xf32, #tpu.memory_space<vmem>>, %arg4: memref<32x128xf32, #tpu.memory_space<vmem>>, %arg5: memref<4x2x32xf32, #tpu.memory_space<vmem>>, %arg6: memref<2x2x32xf32, #tpu.memory_space<vmem>>, %arg7: memref<2x2x32xf32, #tpu.memory_space<vmem>>) attributes {dimension_semantics = [#tpu.dimension_semantics<parallel>, #tpu.dimension_semantics<arbitrary>], iteration_bounds = array<i64: 1, 2>, scalar_prefetch = 0 : i64, scratch_operands = 2 : i64, tpu.core_type = #tpu.core_type<tc>, window_params = [{transform_indices = @transform_0, window_bounds = array<i64: 4, 2, 2, 1>}, {transform_indices = @transform_1, window_bounds = array<i64: 4, 2, 128>}, {pipeline_mode = #tpu.pipeline_mode<synchronous>, transform_indices = @transform_2, window_bounds = array<i64: 32, 128>}, {transform_indices = @transform_3, window_bounds = array<i64: 4, 2, 32>}]} {
    %c0_i32 = arith.constant 0 : i32
    %0 = arith.cmpi eq, %arg1, %c0_i32 : i32
    %1 = arith.extui %0 : i1 to i32
    %c0_i32_0 = arith.constant 0 : i32
    %2 = arith.cmpi ne, %1, %c0_i32_0 : i32
    scf.if %2 {
      %cst_202 = arith.constant 0.000000e+00 : f32
      %456 = vector.broadcast %cst_202 : f32 to vector<2x2x32xf32>
      %c0_203 = arith.constant 0 : index
      %c0_204 = arith.constant 0 : index
      %c0_205 = arith.constant 0 : index
      %457 = vector.load %arg6[%c0_203, %c0_204, %c0_205] : memref<2x2x32xf32, #tpu.memory_space<vmem>>, vector<2x2x32xf32>
      tpu.vector_store %arg6[%c0_203, %c0_204, %c0_205], %456 {strides = array<i32>} : memref<2x2x32xf32, #tpu.memory_space<vmem>>, vector<2x2x32xf32>,
      %cst_206 = arith.constant 0.000000e+00 : f32
      %458 = vector.broadcast %cst_206 : f32 to vector<2x2x32xf32>
      %c0_207 = arith.constant 0 : index
      %c0_208 = arith.constant 0 : index
      %c0_209 = arith.constant 0 : index
      %459 = vector.load %arg7[%c0_207, %c0_208, %c0_209] : memref<2x2x32xf32, #tpu.memory_space<vmem>>, vector<2x2x32xf32>
      tpu.vector_store %arg7[%c0_207, %c0_208, %c0_209], %458 {strides = array<i32>} : memref<2x2x32xf32, #tpu.memory_space<vmem>>, vector<2x2x32xf32>,
    } else {
    }
    %c0 = arith.constant 0 : index
    %c0_1 = arith.constant 0 : index
    %3 = vector.load %arg4[%c0, %c0_1] : memref<32x128xf32, #tpu.memory_space<vmem>>, vector<32x128xf32>
    %c0_i32_2 = arith.constant 0 : i32
    %c4_i32 = arith.constant 4 : i32
    %4 = arith.muli %arg1, %c4_i32 : i32
    %5 = arith.addi %4, %c0_i32_2 : i32
    %6 = arith.index_cast %c0_i32_2 : i32 to index
    %c0_3 = arith.constant 0 : index
    %c0_4 = arith.constant 0 : index
    %c0_5 = arith.constant 0 : index
    %7 = vector.load %arg2[%6, %c0_3, %c0_4, %c0_5] : memref<4x2x2x1xf32, #tpu.memory_space<vmem>>, vector<1x2x2x1xf32>
    %8 = vector.shape_cast %7 : vector<1x2x2x1xf32> to vector<2x2x1xf32>
    %cst = arith.constant 0.000000e+00 : f32
    %9 = vector.broadcast %cst : f32 to vector<2x32xf32>
    %cst_6 = arith.constant 0.000000e+00 : f32
    %10 = vector.broadcast %cst_6 : f32 to vector<2x32xf32>
    %c1_i32 = arith.constant 1 : i32
    %11 = arith.subi %5, %c1_i32 : i32
    %c0_i32_7 = arith.constant 0 : i32
    %12 = arith.subi %11, %c0_i32_7 : i32
    %c0_i32_8 = arith.constant 0 : i32
    %13 = arith.maxsi %12, %c0_i32_8 : i32
    %c2_i32 = arith.constant 2 : i32
    %c0_i32_9 = arith.constant 0 : i32
    %14 = arith.cmpi eq, %c2_i32, %c0_i32_9 : i32
    %c1_i32_10 = arith.constant 1 : i32
    %15 = arith.select %14, %c1_i32_10, %c2_i32 : i32
    %16 = arith.remsi %13, %15 : i32
    %c0_i32_11 = arith.constant 0 : i32
    %17 = arith.cmpi ne, %16, %c0_i32_11 : i32
    %c0_i32_12 = arith.constant 0 : i32
    %18 = arith.cmpi slt, %16, %c0_i32_12 : i32
    %c0_i32_13 = arith.constant 0 : i32
    %19 = arith.cmpi slt, %15, %c0_i32_13 : i32
    %20 = arith.xori %18, %19 : i1
    %21 = arith.andi %20, %17 : i1
    %22 = arith.addi %16, %15 : i32
    %23 = arith.select %21, %22, %16 : i32
    %24 = vector.extract_strided_slice %8 {offsets = [0, 0, 0], sizes = [1, 2, 1], strides = [1, 1, 1]} : vector<2x2x1xf32> to vector<1x2x1xf32>
    %25 = vector.shape_cast %24 : vector<1x2x1xf32> to vector<2x1xf32>
    %26 = arith.index_cast %23 : i32 to index
    %c0_14 = arith.constant 0 : index
    %c0_15 = arith.constant 0 : index
    %27 = vector.load %arg6[%26, %c0_14, %c0_15] : memref<2x2x32xf32, #tpu.memory_space<vmem>>, vector<1x2x32xf32>
    %28 = vector.shape_cast %27 : vector<1x2x32xf32> to vector<2x32xf32>
    %29 = vector.broadcast %25 : vector<2x1xf32> to vector<2x32xf32>
    %30 = arith.mulf %29, %28 : vector<2x32xf32>
    %31 = arith.addf %9, %30 : vector<2x32xf32>
    %32 = arith.index_cast %23 : i32 to index
    %c0_16 = arith.constant 0 : index
    %c0_17 = arith.constant 0 : index
    %33 = vector.load %arg7[%32, %c0_16, %c0_17] : memref<2x2x32xf32, #tpu.memory_space<vmem>>, vector<1x2x32xf32>
    %34 = vector.shape_cast %33 : vector<1x2x32xf32> to vector<2x32xf32>
    %35 = vector.broadcast %25 : vector<2x1xf32> to vector<2x32xf32>
    %36 = arith.mulf %35, %34 : vector<2x32xf32>
    %37 = arith.addf %10, %36 : vector<2x32xf32>
    %c1_i32_18 = arith.constant 1 : i32
    %38 = arith.subi %5, %c1_i32_18 : i32
    %c1_i32_19 = arith.constant 1 : i32
    %39 = arith.subi %38, %c1_i32_19 : i32
    %c0_i32_20 = arith.constant 0 : i32
    %40 = arith.maxsi %39, %c0_i32_20 : i32
    %c2_i32_21 = arith.constant 2 : i32
    %c0_i32_22 = arith.constant 0 : i32
    %41 = arith.cmpi eq, %c2_i32_21, %c0_i32_22 : i32
    %c1_i32_23 = arith.constant 1 : i32
    %42 = arith.select %41, %c1_i32_23, %c2_i32_21 : i32
    %43 = arith.remsi %40, %42 : i32
    %c0_i32_24 = arith.constant 0 : i32
    %44 = arith.cmpi ne, %43, %c0_i32_24 : i32
    %c0_i32_25 = arith.constant 0 : i32
    %45 = arith.cmpi slt, %43, %c0_i32_25 : i32
    %c0_i32_26 = arith.constant 0 : i32
    %46 = arith.cmpi slt, %42, %c0_i32_26 : i32
    %47 = arith.xori %45, %46 : i1
    %48 = arith.andi %47, %44 : i1
    %49 = arith.addi %43, %42 : i32
    %50 = arith.select %48, %49, %43 : i32
    %51 = vector.extract_strided_slice %8 {offsets = [1, 0, 0], sizes = [1, 2, 1], strides = [1, 1, 1]} : vector<2x2x1xf32> to vector<1x2x1xf32>
    %52 = vector.shape_cast %51 : vector<1x2x1xf32> to vector<2x1xf32>
    %53 = arith.index_cast %50 : i32 to index
    %c0_27 = arith.constant 0 : index
    %c0_28 = arith.constant 0 : index
    %54 = vector.load %arg6[%53, %c0_27, %c0_28] : memref<2x2x32xf32, #tpu.memory_space<vmem>>, vector<1x2x32xf32>
    %55 = vector.shape_cast %54 : vector<1x2x32xf32> to vector<2x32xf32>
    %56 = vector.broadcast %52 : vector<2x1xf32> to vector<2x32xf32>
    %57 = arith.mulf %56, %55 : vector<2x32xf32>
    %58 = arith.addf %31, %57 : vector<2x32xf32>
    %59 = arith.index_cast %50 : i32 to index
    %c0_29 = arith.constant 0 : index
    %c0_30 = arith.constant 0 : index
    %60 = vector.load %arg7[%59, %c0_29, %c0_30] : memref<2x2x32xf32, #tpu.memory_space<vmem>>, vector<1x2x32xf32>
    %61 = vector.shape_cast %60 : vector<1x2x32xf32> to vector<2x32xf32>
    %62 = vector.broadcast %52 : vector<2x1xf32> to vector<2x32xf32>
    %63 = arith.mulf %62, %61 : vector<2x32xf32>
    %64 = arith.addf %37, %63 : vector<2x32xf32>
    %65 = arith.index_cast %c0_i32_2 : i32 to index
    %c0_31 = arith.constant 0 : index
    %c0_32 = arith.constant 0 : index
    %66 = vector.load %arg3[%65, %c0_31, %c0_32] : memref<4x2x128xf32, #tpu.memory_space<vmem>>, vector<1x2x128xf32>
    %67 = vector.shape_cast %66 : vector<1x2x128xf32> to vector<2x128xf32>
    %cst_33 = arith.constant dense<0.000000e+00> : vector<2x128xf32>
    %68 = tpu.matmul %58, %3, %cst_33 {dimension_numbers = #tpu.dot_dimension_numbers<[1], [0], [0], [1], [0, 0, 1, 1], [], []>} : vector<2x32xf32>, vector<32x128xf32>, vector<2x128xf32> -> vector<2x128xf32>
    %69 = arith.addf %67, %68 : vector<2x128xf32>
    %70 = vector.extract_strided_slice %69 {offsets = [0, 0], sizes = [2, 32], strides = [1, 1]} : vector<2x128xf32> to vector<2x32xf32>
    %71 = arith.negf %70 : vector<2x32xf32>
    %72 = math.exp %71 : vector<2x32xf32>
    %cst_34 = arith.constant 1.000000e+00 : f32
    %73 = vector.broadcast %cst_34 : f32 to vector<2x32xf32>
    %74 = arith.addf %73, %72 : vector<2x32xf32>
    %75 = arith.divf %73, %74 : vector<2x32xf32>
    %76 = vector.extract_strided_slice %69 {offsets = [0, 32], sizes = [2, 32], strides = [1, 1]} : vector<2x128xf32> to vector<2x32xf32>
    %77 = arith.negf %76 : vector<2x32xf32>
    %78 = math.exp %77 : vector<2x32xf32>
    %cst_35 = arith.constant 1.000000e+00 : f32
    %79 = vector.broadcast %cst_35 : f32 to vector<2x32xf32>
    %80 = arith.addf %79, %78 : vector<2x32xf32>
    %81 = arith.divf %79, %80 : vector<2x32xf32>
    %82 = vector.extract_strided_slice %69 {offsets = [0, 64], sizes = [2, 32], strides = [1, 1]} : vector<2x128xf32> to vector<2x32xf32>
    %83 = math.tanh %82 : vector<2x32xf32>
    %84 = vector.extract_strided_slice %69 {offsets = [0, 96], sizes = [2, 32], strides = [1, 1]} : vector<2x128xf32> to vector<2x32xf32>
    %85 = arith.negf %84 : vector<2x32xf32>
    %86 = math.exp %85 : vector<2x32xf32>
    %cst_36 = arith.constant 1.000000e+00 : f32
    %87 = vector.broadcast %cst_36 : f32 to vector<2x32xf32>
    %88 = arith.addf %87, %86 : vector<2x32xf32>
    %89 = arith.divf %87, %88 : vector<2x32xf32>
    %90 = arith.mulf %81, %64 : vector<2x32xf32>
    %91 = arith.mulf %75, %83 : vector<2x32xf32>
    %92 = arith.addf %90, %91 : vector<2x32xf32>
    %93 = math.tanh %92 : vector<2x32xf32>
    %94 = arith.mulf %89, %93 : vector<2x32xf32>
    %95 = arith.index_cast %c0_i32_2 : i32 to index
    %c0_37 = arith.constant 0 : index
    %c0_38 = arith.constant 0 : index
    %96 = vector.load %arg5[%95, %c0_37, %c0_38] : memref<4x2x32xf32, #tpu.memory_space<vmem>>, vector<1x2x32xf32>
    %97 = vector.shape_cast %96 : vector<1x2x32xf32> to vector<2x32xf32>
    %98 = vector.shape_cast %94 : vector<2x32xf32> to vector<1x2x32xf32>
    tpu.vector_store %arg5[%95, %c0_37, %c0_38], %98 {strides = array<i32>} : memref<4x2x32xf32, #tpu.memory_space<vmem>>, vector<1x2x32xf32>,
    %c2_i32_39 = arith.constant 2 : i32
    %c0_i32_40 = arith.constant 0 : i32
    %99 = arith.cmpi eq, %c2_i32_39, %c0_i32_40 : i32
    %c1_i32_41 = arith.constant 1 : i32
    %100 = arith.select %99, %c1_i32_41, %c2_i32_39 : i32
    %101 = arith.remsi %5, %100 : i32
    %c0_i32_42 = arith.constant 0 : i32
    %102 = arith.cmpi ne, %101, %c0_i32_42 : i32
    %c0_i32_43 = arith.constant 0 : i32
    %103 = arith.cmpi slt, %101, %c0_i32_43 : i32
    %c0_i32_44 = arith.constant 0 : i32
    %104 = arith.cmpi slt, %100, %c0_i32_44 : i32
    %105 = arith.xori %103, %104 : i1
    %106 = arith.andi %105, %102 : i1
    %107 = arith.addi %101, %100 : i32
    %108 = arith.select %106, %107, %101 : i32
    %109 = arith.index_cast %108 : i32 to index
    %c0_45 = arith.constant 0 : index
    %c0_46 = arith.constant 0 : index
    %110 = vector.load %arg6[%109, %c0_45, %c0_46] : memref<2x2x32xf32, #tpu.memory_space<vmem>>, vector<1x2x32xf32>
    %111 = vector.shape_cast %110 : vector<1x2x32xf32> to vector<2x32xf32>
    %112 = vector.shape_cast %94 : vector<2x32xf32> to vector<1x2x32xf32>
    tpu.vector_store %arg6[%109, %c0_45, %c0_46], %112 {strides = array<i32>} : memref<2x2x32xf32, #tpu.memory_space<vmem>>, vector<1x2x32xf32>,
    %113 = arith.index_cast %108 : i32 to index
    %c0_47 = arith.constant 0 : index
    %c0_48 = arith.constant 0 : index
    %114 = vector.load %arg7[%113, %c0_47, %c0_48] : memref<2x2x32xf32, #tpu.memory_space<vmem>>, vector<1x2x32xf32>
    %115 = vector.shape_cast %114 : vector<1x2x32xf32> to vector<2x32xf32>
    %116 = vector.shape_cast %92 : vector<2x32xf32> to vector<1x2x32xf32>
    tpu.vector_store %arg7[%113, %c0_47, %c0_48], %116 {strides = array<i32>} : memref<2x2x32xf32, #tpu.memory_space<vmem>>, vector<1x2x32xf32>,
    %c1_i32_49 = arith.constant 1 : i32
    %c4_i32_50 = arith.constant 4 : i32
    %117 = arith.muli %arg1, %c4_i32_50 : i32
    %118 = arith.addi %117, %c1_i32_49 : i32
    %119 = arith.index_cast %c1_i32_49 : i32 to index
    %c0_51 = arith.constant 0 : index
    %c0_52 = arith.constant 0 : index
    %c0_53 = arith.constant 0 : index
    %120 = vector.load %arg2[%119, %c0_51, %c0_52, %c0_53] : memref<4x2x2x1xf32, #tpu.memory_space<vmem>>, vector<1x2x2x1xf32>
    %121 = vector.shape_cast %120 : vector<1x2x2x1xf32> to vector<2x2x1xf32>
    %cst_54 = arith.constant 0.000000e+00 : f32
    %122 = vector.broadcast %cst_54 : f32 to vector<2x32xf32>
    %cst_55 = arith.constant 0.000000e+00 : f32
    %123 = vector.broadcast %cst_55 : f32 to vector<2x32xf32>
    %c1_i32_56 = arith.constant 1 : i32
    %124 = arith.subi %118, %c1_i32_56 : i32
    %c0_i32_57 = arith.constant 0 : i32
    %125 = arith.subi %124, %c0_i32_57 : i32
    %c0_i32_58 = arith.constant 0 : i32
    %126 = arith.maxsi %125, %c0_i32_58 : i32
    %c2_i32_59 = arith.constant 2 : i32
    %c0_i32_60 = arith.constant 0 : i32
    %127 = arith.cmpi eq, %c2_i32_59, %c0_i32_60 : i32
    %c1_i32_61 = arith.constant 1 : i32
    %128 = arith.select %127, %c1_i32_61, %c2_i32_59 : i32
    %129 = arith.remsi %126, %128 : i32
    %c0_i32_62 = arith.constant 0 : i32
    %130 = arith.cmpi ne, %129, %c0_i32_62 : i32
    %c0_i32_63 = arith.constant 0 : i32
    %131 = arith.cmpi slt, %129, %c0_i32_63 : i32
    %c0_i32_64 = arith.constant 0 : i32
    %132 = arith.cmpi slt, %128, %c0_i32_64 : i32
    %133 = arith.xori %131, %132 : i1
    %134 = arith.andi %133, %130 : i1
    %135 = arith.addi %129, %128 : i32
    %136 = arith.select %134, %135, %129 : i32
    %137 = vector.extract_strided_slice %121 {offsets = [0, 0, 0], sizes = [1, 2, 1], strides = [1, 1, 1]} : vector<2x2x1xf32> to vector<1x2x1xf32>
    %138 = vector.shape_cast %137 : vector<1x2x1xf32> to vector<2x1xf32>
    %139 = arith.index_cast %136 : i32 to index
    %c0_65 = arith.constant 0 : index
    %c0_66 = arith.constant 0 : index
    %140 = vector.load %arg6[%139, %c0_65, %c0_66] : memref<2x2x32xf32, #tpu.memory_space<vmem>>, vector<1x2x32xf32>
    %141 = vector.shape_cast %140 : vector<1x2x32xf32> to vector<2x32xf32>
    %142 = vector.broadcast %138 : vector<2x1xf32> to vector<2x32xf32>
    %143 = arith.mulf %142, %141 : vector<2x32xf32>
    %144 = arith.addf %122, %143 : vector<2x32xf32>
    %145 = arith.index_cast %136 : i32 to index
    %c0_67 = arith.constant 0 : index
    %c0_68 = arith.constant 0 : index
    %146 = vector.load %arg7[%145, %c0_67, %c0_68] : memref<2x2x32xf32, #tpu.memory_space<vmem>>, vector<1x2x32xf32>
    %147 = vector.shape_cast %146 : vector<1x2x32xf32> to vector<2x32xf32>
    %148 = vector.broadcast %138 : vector<2x1xf32> to vector<2x32xf32>
    %149 = arith.mulf %148, %147 : vector<2x32xf32>
    %150 = arith.addf %123, %149 : vector<2x32xf32>
    %c1_i32_69 = arith.constant 1 : i32
    %151 = arith.subi %118, %c1_i32_69 : i32
    %c1_i32_70 = arith.constant 1 : i32
    %152 = arith.subi %151, %c1_i32_70 : i32
    %c0_i32_71 = arith.constant 0 : i32
    %153 = arith.maxsi %152, %c0_i32_71 : i32
    %c2_i32_72 = arith.constant 2 : i32
    %c0_i32_73 = arith.constant 0 : i32
    %154 = arith.cmpi eq, %c2_i32_72, %c0_i32_73 : i32
    %c1_i32_74 = arith.constant 1 : i32
    %155 = arith.select %154, %c1_i32_74, %c2_i32_72 : i32
    %156 = arith.remsi %153, %155 : i32
    %c0_i32_75 = arith.constant 0 : i32
    %157 = arith.cmpi ne, %156, %c0_i32_75 : i32
    %c0_i32_76 = arith.constant 0 : i32
    %158 = arith.cmpi slt, %156, %c0_i32_76 : i32
    %c0_i32_77 = arith.constant 0 : i32
    %159 = arith.cmpi slt, %155, %c0_i32_77 : i32
    %160 = arith.xori %158, %159 : i1
    %161 = arith.andi %160, %157 : i1
    %162 = arith.addi %156, %155 : i32
    %163 = arith.select %161, %162, %156 : i32
    %164 = vector.extract_strided_slice %121 {offsets = [1, 0, 0], sizes = [1, 2, 1], strides = [1, 1, 1]} : vector<2x2x1xf32> to vector<1x2x1xf32>
    %165 = vector.shape_cast %164 : vector<1x2x1xf32> to vector<2x1xf32>
    %166 = arith.index_cast %163 : i32 to index
    %c0_78 = arith.constant 0 : index
    %c0_79 = arith.constant 0 : index
    %167 = vector.load %arg6[%166, %c0_78, %c0_79] : memref<2x2x32xf32, #tpu.memory_space<vmem>>, vector<1x2x32xf32>
    %168 = vector.shape_cast %167 : vector<1x2x32xf32> to vector<2x32xf32>
    %169 = vector.broadcast %165 : vector<2x1xf32> to vector<2x32xf32>
    %170 = arith.mulf %169, %168 : vector<2x32xf32>
    %171 = arith.addf %144, %170 : vector<2x32xf32>
    %172 = arith.index_cast %163 : i32 to index
    %c0_80 = arith.constant 0 : index
    %c0_81 = arith.constant 0 : index
    %173 = vector.load %arg7[%172, %c0_80, %c0_81] : memref<2x2x32xf32, #tpu.memory_space<vmem>>, vector<1x2x32xf32>
    %174 = vector.shape_cast %173 : vector<1x2x32xf32> to vector<2x32xf32>
    %175 = vector.broadcast %165 : vector<2x1xf32> to vector<2x32xf32>
    %176 = arith.mulf %175, %174 : vector<2x32xf32>
    %177 = arith.addf %150, %176 : vector<2x32xf32>
    %178 = arith.index_cast %c1_i32_49 : i32 to index
    %c0_82 = arith.constant 0 : index
    %c0_83 = arith.constant 0 : index
    %179 = vector.load %arg3[%178, %c0_82, %c0_83] : memref<4x2x128xf32, #tpu.memory_space<vmem>>, vector<1x2x128xf32>
    %180 = vector.shape_cast %179 : vector<1x2x128xf32> to vector<2x128xf32>
    %cst_84 = arith.constant dense<0.000000e+00> : vector<2x128xf32>
    %181 = tpu.matmul %171, %3, %cst_84 {dimension_numbers = #tpu.dot_dimension_numbers<[1], [0], [0], [1], [0, 0, 1, 1], [], []>} : vector<2x32xf32>, vector<32x128xf32>, vector<2x128xf32> -> vector<2x128xf32>
    %182 = arith.addf %180, %181 : vector<2x128xf32>
    %183 = vector.extract_strided_slice %182 {offsets = [0, 0], sizes = [2, 32], strides = [1, 1]} : vector<2x128xf32> to vector<2x32xf32>
    %184 = arith.negf %183 : vector<2x32xf32>
    %185 = math.exp %184 : vector<2x32xf32>
    %cst_85 = arith.constant 1.000000e+00 : f32
    %186 = vector.broadcast %cst_85 : f32 to vector<2x32xf32>
    %187 = arith.addf %186, %185 : vector<2x32xf32>
    %188 = arith.divf %186, %187 : vector<2x32xf32>
    %189 = vector.extract_strided_slice %182 {offsets = [0, 32], sizes = [2, 32], strides = [1, 1]} : vector<2x128xf32> to vector<2x32xf32>
    %190 = arith.negf %189 : vector<2x32xf32>
    %191 = math.exp %190 : vector<2x32xf32>
    %cst_86 = arith.constant 1.000000e+00 : f32
    %192 = vector.broadcast %cst_86 : f32 to vector<2x32xf32>
    %193 = arith.addf %192, %191 : vector<2x32xf32>
    %194 = arith.divf %192, %193 : vector<2x32xf32>
    %195 = vector.extract_strided_slice %182 {offsets = [0, 64], sizes = [2, 32], strides = [1, 1]} : vector<2x128xf32> to vector<2x32xf32>
    %196 = math.tanh %195 : vector<2x32xf32>
    %197 = vector.extract_strided_slice %182 {offsets = [0, 96], sizes = [2, 32], strides = [1, 1]} : vector<2x128xf32> to vector<2x32xf32>
    %198 = arith.negf %197 : vector<2x32xf32>
    %199 = math.exp %198 : vector<2x32xf32>
    %cst_87 = arith.constant 1.000000e+00 : f32
    %200 = vector.broadcast %cst_87 : f32 to vector<2x32xf32>
    %201 = arith.addf %200, %199 : vector<2x32xf32>
    %202 = arith.divf %200, %201 : vector<2x32xf32>
    %203 = arith.mulf %194, %177 : vector<2x32xf32>
    %204 = arith.mulf %188, %196 : vector<2x32xf32>
    %205 = arith.addf %203, %204 : vector<2x32xf32>
    %206 = math.tanh %205 : vector<2x32xf32>
    %207 = arith.mulf %202, %206 : vector<2x32xf32>
    %208 = arith.index_cast %c1_i32_49 : i32 to index
    %c0_88 = arith.constant 0 : index
    %c0_89 = arith.constant 0 : index
    %209 = vector.load %arg5[%208, %c0_88, %c0_89] : memref<4x2x32xf32, #tpu.memory_space<vmem>>, vector<1x2x32xf32>
    %210 = vector.shape_cast %209 : vector<1x2x32xf32> to vector<2x32xf32>
    %211 = vector.shape_cast %207 : vector<2x32xf32> to vector<1x2x32xf32>
    tpu.vector_store %arg5[%208, %c0_88, %c0_89], %211 {strides = array<i32>} : memref<4x2x32xf32, #tpu.memory_space<vmem>>, vector<1x2x32xf32>,
    %c2_i32_90 = arith.constant 2 : i32
    %c0_i32_91 = arith.constant 0 : i32
    %212 = arith.cmpi eq, %c2_i32_90, %c0_i32_91 : i32
    %c1_i32_92 = arith.constant 1 : i32
    %213 = arith.select %212, %c1_i32_92, %c2_i32_90 : i32
    %214 = arith.remsi %118, %213 : i32
    %c0_i32_93 = arith.constant 0 : i32
    %215 = arith.cmpi ne, %214, %c0_i32_93 : i32
    %c0_i32_94 = arith.constant 0 : i32
    %216 = arith.cmpi slt, %214, %c0_i32_94 : i32
    %c0_i32_95 = arith.constant 0 : i32
    %217 = arith.cmpi slt, %213, %c0_i32_95 : i32
    %218 = arith.xori %216, %217 : i1
    %219 = arith.andi %218, %215 : i1
    %220 = arith.addi %214, %213 : i32
    %221 = arith.select %219, %220, %214 : i32
    %222 = arith.index_cast %221 : i32 to index
    %c0_96 = arith.constant 0 : index
    %c0_97 = arith.constant 0 : index
    %223 = vector.load %arg6[%222, %c0_96, %c0_97] : memref<2x2x32xf32, #tpu.memory_space<vmem>>, vector<1x2x32xf32>
    %224 = vector.shape_cast %223 : vector<1x2x32xf32> to vector<2x32xf32>
    %225 = vector.shape_cast %207 : vector<2x32xf32> to vector<1x2x32xf32>
    tpu.vector_store %arg6[%222, %c0_96, %c0_97], %225 {strides = array<i32>} : memref<2x2x32xf32, #tpu.memory_space<vmem>>, vector<1x2x32xf32>,
    %226 = arith.index_cast %221 : i32 to index
    %c0_98 = arith.constant 0 : index
    %c0_99 = arith.constant 0 : index
    %227 = vector.load %arg7[%226, %c0_98, %c0_99] : memref<2x2x32xf32, #tpu.memory_space<vmem>>, vector<1x2x32xf32>
    %228 = vector.shape_cast %227 : vector<1x2x32xf32> to vector<2x32xf32>
    %229 = vector.shape_cast %205 : vector<2x32xf32> to vector<1x2x32xf32>
    tpu.vector_store %arg7[%226, %c0_98, %c0_99], %229 {strides = array<i32>} : memref<2x2x32xf32, #tpu.memory_space<vmem>>, vector<1x2x32xf32>,
    %c2_i32_100 = arith.constant 2 : i32
    %c4_i32_101 = arith.constant 4 : i32
    %230 = arith.muli %arg1, %c4_i32_101 : i32
    %231 = arith.addi %230, %c2_i32_100 : i32
    %232 = arith.index_cast %c2_i32_100 : i32 to index
    %c0_102 = arith.constant 0 : index
    %c0_103 = arith.constant 0 : index
    %c0_104 = arith.constant 0 : index
    %233 = vector.load %arg2[%232, %c0_102, %c0_103, %c0_104] : memref<4x2x2x1xf32, #tpu.memory_space<vmem>>, vector<1x2x2x1xf32>
    %234 = vector.shape_cast %233 : vector<1x2x2x1xf32> to vector<2x2x1xf32>
    %cst_105 = arith.constant 0.000000e+00 : f32
    %235 = vector.broadcast %cst_105 : f32 to vector<2x32xf32>
    %cst_106 = arith.constant 0.000000e+00 : f32
    %236 = vector.broadcast %cst_106 : f32 to vector<2x32xf32>
    %c1_i32_107 = arith.constant 1 : i32
    %237 = arith.subi %231, %c1_i32_107 : i32
    %c0_i32_108 = arith.constant 0 : i32
    %238 = arith.subi %237, %c0_i32_108 : i32
    %c0_i32_109 = arith.constant 0 : i32
    %239 = arith.maxsi %238, %c0_i32_109 : i32
    %c2_i32_110 = arith.constant 2 : i32
    %c0_i32_111 = arith.constant 0 : i32
    %240 = arith.cmpi eq, %c2_i32_110, %c0_i32_111 : i32
    %c1_i32_112 = arith.constant 1 : i32
    %241 = arith.select %240, %c1_i32_112, %c2_i32_110 : i32
    %242 = arith.remsi %239, %241 : i32
    %c0_i32_113 = arith.constant 0 : i32
    %243 = arith.cmpi ne, %242, %c0_i32_113 : i32
    %c0_i32_114 = arith.constant 0 : i32
    %244 = arith.cmpi slt, %242, %c0_i32_114 : i32
    %c0_i32_115 = arith.constant 0 : i32
    %245 = arith.cmpi slt, %241, %c0_i32_115 : i32
    %246 = arith.xori %244, %245 : i1
    %247 = arith.andi %246, %243 : i1
    %248 = arith.addi %242, %241 : i32
    %249 = arith.select %247, %248, %242 : i32
    %250 = vector.extract_strided_slice %234 {offsets = [0, 0, 0], sizes = [1, 2, 1], strides = [1, 1, 1]} : vector<2x2x1xf32> to vector<1x2x1xf32>
    %251 = vector.shape_cast %250 : vector<1x2x1xf32> to vector<2x1xf32>
    %252 = arith.index_cast %249 : i32 to index
    %c0_116 = arith.constant 0 : index
    %c0_117 = arith.constant 0 : index
    %253 = vector.load %arg6[%252, %c0_116, %c0_117] : memref<2x2x32xf32, #tpu.memory_space<vmem>>, vector<1x2x32xf32>
    %254 = vector.shape_cast %253 : vector<1x2x32xf32> to vector<2x32xf32>
    %255 = vector.broadcast %251 : vector<2x1xf32> to vector<2x32xf32>
    %256 = arith.mulf %255, %254 : vector<2x32xf32>
    %257 = arith.addf %235, %256 : vector<2x32xf32>
    %258 = arith.index_cast %249 : i32 to index
    %c0_118 = arith.constant 0 : index
    %c0_119 = arith.constant 0 : index
    %259 = vector.load %arg7[%258, %c0_118, %c0_119] : memref<2x2x32xf32, #tpu.memory_space<vmem>>, vector<1x2x32xf32>
    %260 = vector.shape_cast %259 : vector<1x2x32xf32> to vector<2x32xf32>
    %261 = vector.broadcast %251 : vector<2x1xf32> to vector<2x32xf32>
    %262 = arith.mulf %261, %260 : vector<2x32xf32>
    %263 = arith.addf %236, %262 : vector<2x32xf32>
    %c1_i32_120 = arith.constant 1 : i32
    %264 = arith.subi %231, %c1_i32_120 : i32
    %c1_i32_121 = arith.constant 1 : i32
    %265 = arith.subi %264, %c1_i32_121 : i32
    %c0_i32_122 = arith.constant 0 : i32
    %266 = arith.maxsi %265, %c0_i32_122 : i32
    %c2_i32_123 = arith.constant 2 : i32
    %c0_i32_124 = arith.constant 0 : i32
    %267 = arith.cmpi eq, %c2_i32_123, %c0_i32_124 : i32
    %c1_i32_125 = arith.constant 1 : i32
    %268 = arith.select %267, %c1_i32_125, %c2_i32_123 : i32
    %269 = arith.remsi %266, %268 : i32
    %c0_i32_126 = arith.constant 0 : i32
    %270 = arith.cmpi ne, %269, %c0_i32_126 : i32
    %c0_i32_127 = arith.constant 0 : i32
    %271 = arith.cmpi slt, %269, %c0_i32_127 : i32
    %c0_i32_128 = arith.constant 0 : i32
    %272 = arith.cmpi slt, %268, %c0_i32_128 : i32
    %273 = arith.xori %271, %272 : i1
    %274 = arith.andi %273, %270 : i1
    %275 = arith.addi %269, %268 : i32
    %276 = arith.select %274, %275, %269 : i32
    %277 = vector.extract_strided_slice %234 {offsets = [1, 0, 0], sizes = [1, 2, 1], strides = [1, 1, 1]} : vector<2x2x1xf32> to vector<1x2x1xf32>
    %278 = vector.shape_cast %277 : vector<1x2x1xf32> to vector<2x1xf32>
    %279 = arith.index_cast %276 : i32 to index
    %c0_129 = arith.constant 0 : index
    %c0_130 = arith.constant 0 : index
    %280 = vector.load %arg6[%279, %c0_129, %c0_130] : memref<2x2x32xf32, #tpu.memory_space<vmem>>, vector<1x2x32xf32>
    %281 = vector.shape_cast %280 : vector<1x2x32xf32> to vector<2x32xf32>
    %282 = vector.broadcast %278 : vector<2x1xf32> to vector<2x32xf32>
    %283 = arith.mulf %282, %281 : vector<2x32xf32>
    %284 = arith.addf %257, %283 : vector<2x32xf32>
    %285 = arith.index_cast %276 : i32 to index
    %c0_131 = arith.constant 0 : index
    %c0_132 = arith.constant 0 : index
    %286 = vector.load %arg7[%285, %c0_131, %c0_132] : memref<2x2x32xf32, #tpu.memory_space<vmem>>, vector<1x2x32xf32>
    %287 = vector.shape_cast %286 : vector<1x2x32xf32> to vector<2x32xf32>
    %288 = vector.broadcast %278 : vector<2x1xf32> to vector<2x32xf32>
    %289 = arith.mulf %288, %287 : vector<2x32xf32>
    %290 = arith.addf %263, %289 : vector<2x32xf32>
    %291 = arith.index_cast %c2_i32_100 : i32 to index
    %c0_133 = arith.constant 0 : index
    %c0_134 = arith.constant 0 : index
    %292 = vector.load %arg3[%291, %c0_133, %c0_134] : memref<4x2x128xf32, #tpu.memory_space<vmem>>, vector<1x2x128xf32>
    %293 = vector.shape_cast %292 : vector<1x2x128xf32> to vector<2x128xf32>
    %cst_135 = arith.constant dense<0.000000e+00> : vector<2x128xf32>
    %294 = tpu.matmul %284, %3, %cst_135 {dimension_numbers = #tpu.dot_dimension_numbers<[1], [0], [0], [1], [0, 0, 1, 1], [], []>} : vector<2x32xf32>, vector<32x128xf32>, vector<2x128xf32> -> vector<2x128xf32>
    %295 = arith.addf %293, %294 : vector<2x128xf32>
    %296 = vector.extract_strided_slice %295 {offsets = [0, 0], sizes = [2, 32], strides = [1, 1]} : vector<2x128xf32> to vector<2x32xf32>
    %297 = arith.negf %296 : vector<2x32xf32>
    %298 = math.exp %297 : vector<2x32xf32>
    %cst_136 = arith.constant 1.000000e+00 : f32
    %299 = vector.broadcast %cst_136 : f32 to vector<2x32xf32>
    %300 = arith.addf %299, %298 : vector<2x32xf32>
    %301 = arith.divf %299, %300 : vector<2x32xf32>
    %302 = vector.extract_strided_slice %295 {offsets = [0, 32], sizes = [2, 32], strides = [1, 1]} : vector<2x128xf32> to vector<2x32xf32>
    %303 = arith.negf %302 : vector<2x32xf32>
    %304 = math.exp %303 : vector<2x32xf32>
    %cst_137 = arith.constant 1.000000e+00 : f32
    %305 = vector.broadcast %cst_137 : f32 to vector<2x32xf32>
    %306 = arith.addf %305, %304 : vector<2x32xf32>
    %307 = arith.divf %305, %306 : vector<2x32xf32>
    %308 = vector.extract_strided_slice %295 {offsets = [0, 64], sizes = [2, 32], strides = [1, 1]} : vector<2x128xf32> to vector<2x32xf32>
    %309 = math.tanh %308 : vector<2x32xf32>
    %310 = vector.extract_strided_slice %295 {offsets = [0, 96], sizes = [2, 32], strides = [1, 1]} : vector<2x128xf32> to vector<2x32xf32>
    %311 = arith.negf %310 : vector<2x32xf32>
    %312 = math.exp %311 : vector<2x32xf32>
    %cst_138 = arith.constant 1.000000e+00 : f32
    %313 = vector.broadcast %cst_138 : f32 to vector<2x32xf32>
    %314 = arith.addf %313, %312 : vector<2x32xf32>
    %315 = arith.divf %313, %314 : vector<2x32xf32>
    %316 = arith.mulf %307, %290 : vector<2x32xf32>
    %317 = arith.mulf %301, %309 : vector<2x32xf32>
    %318 = arith.addf %316, %317 : vector<2x32xf32>
    %319 = math.tanh %318 : vector<2x32xf32>
    %320 = arith.mulf %315, %319 : vector<2x32xf32>
    %321 = arith.index_cast %c2_i32_100 : i32 to index
    %c0_139 = arith.constant 0 : index
    %c0_140 = arith.constant 0 : index
    %322 = vector.load %arg5[%321, %c0_139, %c0_140] : memref<4x2x32xf32, #tpu.memory_space<vmem>>, vector<1x2x32xf32>
    %323 = vector.shape_cast %322 : vector<1x2x32xf32> to vector<2x32xf32>
    %324 = vector.shape_cast %320 : vector<2x32xf32> to vector<1x2x32xf32>
    tpu.vector_store %arg5[%321, %c0_139, %c0_140], %324 {strides = array<i32>} : memref<4x2x32xf32, #tpu.memory_space<vmem>>, vector<1x2x32xf32>,
    %c2_i32_141 = arith.constant 2 : i32
    %c0_i32_142 = arith.constant 0 : i32
    %325 = arith.cmpi eq, %c2_i32_141, %c0_i32_142 : i32
    %c1_i32_143 = arith.constant 1 : i32
    %326 = arith.select %325, %c1_i32_143, %c2_i32_141 : i32
    %327 = arith.remsi %231, %326 : i32
    %c0_i32_144 = arith.constant 0 : i32
    %328 = arith.cmpi ne, %327, %c0_i32_144 : i32
    %c0_i32_145 = arith.constant 0 : i32
    %329 = arith.cmpi slt, %327, %c0_i32_145 : i32
    %c0_i32_146 = arith.constant 0 : i32
    %330 = arith.cmpi slt, %326, %c0_i32_146 : i32
    %331 = arith.xori %329, %330 : i1
    %332 = arith.andi %331, %328 : i1
    %333 = arith.addi %327, %326 : i32
    %334 = arith.select %332, %333, %327 : i32
    %335 = arith.index_cast %334 : i32 to index
    %c0_147 = arith.constant 0 : index
    %c0_148 = arith.constant 0 : index
    %336 = vector.load %arg6[%335, %c0_147, %c0_148] : memref<2x2x32xf32, #tpu.memory_space<vmem>>, vector<1x2x32xf32>
    %337 = vector.shape_cast %336 : vector<1x2x32xf32> to vector<2x32xf32>
    %338 = vector.shape_cast %320 : vector<2x32xf32> to vector<1x2x32xf32>
    tpu.vector_store %arg6[%335, %c0_147, %c0_148], %338 {strides = array<i32>} : memref<2x2x32xf32, #tpu.memory_space<vmem>>, vector<1x2x32xf32>,
    %339 = arith.index_cast %334 : i32 to index
    %c0_149 = arith.constant 0 : index
    %c0_150 = arith.constant 0 : index
    %340 = vector.load %arg7[%339, %c0_149, %c0_150] : memref<2x2x32xf32, #tpu.memory_space<vmem>>, vector<1x2x32xf32>
    %341 = vector.shape_cast %340 : vector<1x2x32xf32> to vector<2x32xf32>
    %342 = vector.shape_cast %318 : vector<2x32xf32> to vector<1x2x32xf32>
    tpu.vector_store %arg7[%339, %c0_149, %c0_150], %342 {strides = array<i32>} : memref<2x2x32xf32, #tpu.memory_space<vmem>>, vector<1x2x32xf32>,
    %c3_i32 = arith.constant 3 : i32
    %c4_i32_151 = arith.constant 4 : i32
    %343 = arith.muli %arg1, %c4_i32_151 : i32
    %344 = arith.addi %343, %c3_i32 : i32
    %345 = arith.index_cast %c3_i32 : i32 to index
    %c0_152 = arith.constant 0 : index
    %c0_153 = arith.constant 0 : index
    %c0_154 = arith.constant 0 : index
    %346 = vector.load %arg2[%345, %c0_152, %c0_153, %c0_154] : memref<4x2x2x1xf32, #tpu.memory_space<vmem>>, vector<1x2x2x1xf32>
    %347 = vector.shape_cast %346 : vector<1x2x2x1xf32> to vector<2x2x1xf32>
    %cst_155 = arith.constant 0.000000e+00 : f32
    %348 = vector.broadcast %cst_155 : f32 to vector<2x32xf32>
    %cst_156 = arith.constant 0.000000e+00 : f32
    %349 = vector.broadcast %cst_156 : f32 to vector<2x32xf32>
    %c1_i32_157 = arith.constant 1 : i32
    %350 = arith.subi %344, %c1_i32_157 : i32
    %c0_i32_158 = arith.constant 0 : i32
    %351 = arith.subi %350, %c0_i32_158 : i32
    %c0_i32_159 = arith.constant 0 : i32
    %352 = arith.maxsi %351, %c0_i32_159 : i32
    %c2_i32_160 = arith.constant 2 : i32
    %c0_i32_161 = arith.constant 0 : i32
    %353 = arith.cmpi eq, %c2_i32_160, %c0_i32_161 : i32
    %c1_i32_162 = arith.constant 1 : i32
    %354 = arith.select %353, %c1_i32_162, %c2_i32_160 : i32
    %355 = arith.remsi %352, %354 : i32
    %c0_i32_163 = arith.constant 0 : i32
    %356 = arith.cmpi ne, %355, %c0_i32_163 : i32
    %c0_i32_164 = arith.constant 0 : i32
    %357 = arith.cmpi slt, %355, %c0_i32_164 : i32
    %c0_i32_165 = arith.constant 0 : i32
    %358 = arith.cmpi slt, %354, %c0_i32_165 : i32
    %359 = arith.xori %357, %358 : i1
    %360 = arith.andi %359, %356 : i1
    %361 = arith.addi %355, %354 : i32
    %362 = arith.select %360, %361, %355 : i32
    %363 = vector.extract_strided_slice %347 {offsets = [0, 0, 0], sizes = [1, 2, 1], strides = [1, 1, 1]} : vector<2x2x1xf32> to vector<1x2x1xf32>
    %364 = vector.shape_cast %363 : vector<1x2x1xf32> to vector<2x1xf32>
    %365 = arith.index_cast %362 : i32 to index
    %c0_166 = arith.constant 0 : index
    %c0_167 = arith.constant 0 : index
    %366 = vector.load %arg6[%365, %c0_166, %c0_167] : memref<2x2x32xf32, #tpu.memory_space<vmem>>, vector<1x2x32xf32>
    %367 = vector.shape_cast %366 : vector<1x2x32xf32> to vector<2x32xf32>
    %368 = vector.broadcast %364 : vector<2x1xf32> to vector<2x32xf32>
    %369 = arith.mulf %368, %367 : vector<2x32xf32>
    %370 = arith.addf %348, %369 : vector<2x32xf32>
    %371 = arith.index_cast %362 : i32 to index
    %c0_168 = arith.constant 0 : index
    %c0_169 = arith.constant 0 : index
    %372 = vector.load %arg7[%371, %c0_168, %c0_169] : memref<2x2x32xf32, #tpu.memory_space<vmem>>, vector<1x2x32xf32>
    %373 = vector.shape_cast %372 : vector<1x2x32xf32> to vector<2x32xf32>
    %374 = vector.broadcast %364 : vector<2x1xf32> to vector<2x32xf32>
    %375 = arith.mulf %374, %373 : vector<2x32xf32>
    %376 = arith.addf %349, %375 : vector<2x32xf32>
    %c1_i32_170 = arith.constant 1 : i32
    %377 = arith.subi %344, %c1_i32_170 : i32
    %c1_i32_171 = arith.constant 1 : i32
    %378 = arith.subi %377, %c1_i32_171 : i32
    %c0_i32_172 = arith.constant 0 : i32
    %379 = arith.maxsi %378, %c0_i32_172 : i32
    %c2_i32_173 = arith.constant 2 : i32
    %c0_i32_174 = arith.constant 0 : i32
    %380 = arith.cmpi eq, %c2_i32_173, %c0_i32_174 : i32
    %c1_i32_175 = arith.constant 1 : i32
    %381 = arith.select %380, %c1_i32_175, %c2_i32_173 : i32
    %382 = arith.remsi %379, %381 : i32
    %c0_i32_176 = arith.constant 0 : i32
    %383 = arith.cmpi ne, %382, %c0_i32_176 : i32
    %c0_i32_177 = arith.constant 0 : i32
    %384 = arith.cmpi slt, %382, %c0_i32_177 : i32
    %c0_i32_178 = arith.constant 0 : i32
    %385 = arith.cmpi slt, %381, %c0_i32_178 : i32
    %386 = arith.xori %384, %385 : i1
    %387 = arith.andi %386, %383 : i1
    %388 = arith.addi %382, %381 : i32
    %389 = arith.select %387, %388, %382 : i32
    %390 = vector.extract_strided_slice %347 {offsets = [1, 0, 0], sizes = [1, 2, 1], strides = [1, 1, 1]} : vector<2x2x1xf32> to vector<1x2x1xf32>
    %391 = vector.shape_cast %390 : vector<1x2x1xf32> to vector<2x1xf32>
    %392 = arith.index_cast %389 : i32 to index
    %c0_179 = arith.constant 0 : index
    %c0_180 = arith.constant 0 : index
    %393 = vector.load %arg6[%392, %c0_179, %c0_180] : memref<2x2x32xf32, #tpu.memory_space<vmem>>, vector<1x2x32xf32>
    %394 = vector.shape_cast %393 : vector<1x2x32xf32> to vector<2x32xf32>
    %395 = vector.broadcast %391 : vector<2x1xf32> to vector<2x32xf32>
    %396 = arith.mulf %395, %394 : vector<2x32xf32>
    %397 = arith.addf %370, %396 : vector<2x32xf32>
    %398 = arith.index_cast %389 : i32 to index
    %c0_181 = arith.constant 0 : index
    %c0_182 = arith.constant 0 : index
    %399 = vector.load %arg7[%398, %c0_181, %c0_182] : memref<2x2x32xf32, #tpu.memory_space<vmem>>, vector<1x2x32xf32>
    %400 = vector.shape_cast %399 : vector<1x2x32xf32> to vector<2x32xf32>
    %401 = vector.broadcast %391 : vector<2x1xf32> to vector<2x32xf32>
    %402 = arith.mulf %401, %400 : vector<2x32xf32>
    %403 = arith.addf %376, %402 : vector<2x32xf32>
    %404 = arith.index_cast %c3_i32 : i32 to index
    %c0_183 = arith.constant 0 : index
    %c0_184 = arith.constant 0 : index
    %405 = vector.load %arg3[%404, %c0_183, %c0_184] : memref<4x2x128xf32, #tpu.memory_space<vmem>>, vector<1x2x128xf32>
    %406 = vector.shape_cast %405 : vector<1x2x128xf32> to vector<2x128xf32>
    %cst_185 = arith.constant dense<0.000000e+00> : vector<2x128xf32>
    %407 = tpu.matmul %397, %3, %cst_185 {dimension_numbers = #tpu.dot_dimension_numbers<[1], [0], [0], [1], [0, 0, 1, 1], [], []>} : vector<2x32xf32>, vector<32x128xf32>, vector<2x128xf32> -> vector<2x128xf32>
    %408 = arith.addf %406, %407 : vector<2x128xf32>
    %409 = vector.extract_strided_slice %408 {offsets = [0, 0], sizes = [2, 32], strides = [1, 1]} : vector<2x128xf32> to vector<2x32xf32>
    %410 = arith.negf %409 : vector<2x32xf32>
    %411 = math.exp %410 : vector<2x32xf32>
    %cst_186 = arith.constant 1.000000e+00 : f32
    %412 = vector.broadcast %cst_186 : f32 to vector<2x32xf32>
    %413 = arith.addf %412, %411 : vector<2x32xf32>
    %414 = arith.divf %412, %413 : vector<2x32xf32>
    %415 = vector.extract_strided_slice %408 {offsets = [0, 32], sizes = [2, 32], strides = [1, 1]} : vector<2x128xf32> to vector<2x32xf32>
    %416 = arith.negf %415 : vector<2x32xf32>
    %417 = math.exp %416 : vector<2x32xf32>
    %cst_187 = arith.constant 1.000000e+00 : f32
    %418 = vector.broadcast %cst_187 : f32 to vector<2x32xf32>
    %419 = arith.addf %418, %417 : vector<2x32xf32>
    %420 = arith.divf %418, %419 : vector<2x32xf32>
    %421 = vector.extract_strided_slice %408 {offsets = [0, 64], sizes = [2, 32], strides = [1, 1]} : vector<2x128xf32> to vector<2x32xf32>
    %422 = math.tanh %421 : vector<2x32xf32>
    %423 = vector.extract_strided_slice %408 {offsets = [0, 96], sizes = [2, 32], strides = [1, 1]} : vector<2x128xf32> to vector<2x32xf32>
    %424 = arith.negf %423 : vector<2x32xf32>
    %425 = math.exp %424 : vector<2x32xf32>
    %cst_188 = arith.constant 1.000000e+00 : f32
    %426 = vector.broadcast %cst_188 : f32 to vector<2x32xf32>
    %427 = arith.addf %426, %425 : vector<2x32xf32>
    %428 = arith.divf %426, %427 : vector<2x32xf32>
    %429 = arith.mulf %420, %403 : vector<2x32xf32>
    %430 = arith.mulf %414, %422 : vector<2x32xf32>
    %431 = arith.addf %429, %430 : vector<2x32xf32>
    %432 = math.tanh %431 : vector<2x32xf32>
    %433 = arith.mulf %428, %432 : vector<2x32xf32>
    %434 = arith.index_cast %c3_i32 : i32 to index
    %c0_189 = arith.constant 0 : index
    %c0_190 = arith.constant 0 : index
    %435 = vector.load %arg5[%434, %c0_189, %c0_190] : memref<4x2x32xf32, #tpu.memory_space<vmem>>, vector<1x2x32xf32>
    %436 = vector.shape_cast %435 : vector<1x2x32xf32> to vector<2x32xf32>
    %437 = vector.shape_cast %433 : vector<2x32xf32> to vector<1x2x32xf32>
    tpu.vector_store %arg5[%434, %c0_189, %c0_190], %437 {strides = array<i32>} : memref<4x2x32xf32, #tpu.memory_space<vmem>>, vector<1x2x32xf32>,
    %c2_i32_191 = arith.constant 2 : i32
    %c0_i32_192 = arith.constant 0 : i32
    %438 = arith.cmpi eq, %c2_i32_191, %c0_i32_192 : i32
    %c1_i32_193 = arith.constant 1 : i32
    %439 = arith.select %438, %c1_i32_193, %c2_i32_191 : i32
    %440 = arith.remsi %344, %439 : i32
    %c0_i32_194 = arith.constant 0 : i32
    %441 = arith.cmpi ne, %440, %c0_i32_194 : i32
    %c0_i32_195 = arith.constant 0 : i32
    %442 = arith.cmpi slt, %440, %c0_i32_195 : i32
    %c0_i32_196 = arith.constant 0 : i32
    %443 = arith.cmpi slt, %439, %c0_i32_196 : i32
    %444 = arith.xori %442, %443 : i1
    %445 = arith.andi %444, %441 : i1
    %446 = arith.addi %440, %439 : i32
    %447 = arith.select %445, %446, %440 : i32
    %448 = arith.index_cast %447 : i32 to index
    %c0_197 = arith.constant 0 : index
    %c0_198 = arith.constant 0 : index
    %449 = vector.load %arg6[%448, %c0_197, %c0_198] : memref<2x2x32xf32, #tpu.memory_space<vmem>>, vector<1x2x32xf32>
    %450 = vector.shape_cast %449 : vector<1x2x32xf32> to vector<2x32xf32>
    %451 = vector.shape_cast %433 : vector<2x32xf32> to vector<1x2x32xf32>
    tpu.vector_store %arg6[%448, %c0_197, %c0_198], %451 {strides = array<i32>} : memref<2x2x32xf32, #tpu.memory_space<vmem>>, vector<1x2x32xf32>,
    %452 = arith.index_cast %447 : i32 to index
    %c0_199 = arith.constant 0 : index
    %c0_200 = arith.constant 0 : index
    %453 = vector.load %arg7[%452, %c0_199, %c0_200] : memref<2x2x32xf32, #tpu.memory_space<vmem>>, vector<1x2x32xf32>
    %454 = vector.shape_cast %453 : vector<1x2x32xf32> to vector<2x32xf32>
    %455 = vector.shape_cast %431 : vector<2x32xf32> to vector<1x2x32xf32>
    tpu.vector_store %arg7[%452, %c0_199, %c0_200], %455 {strides = array<i32>} : memref<2x2x32xf32, #tpu.memory_space<vmem>>, vector<1x2x32xf32>,
    %c4_i32_201 = arith.constant 4 : i32
    return
  }
  func.func @transform_0(%arg0: i32, %arg1: i32) -> (i32, i32, i32, i32) {
    %c0_i32 = arith.constant 0 : i32
    %c0_i32_0 = arith.constant 0 : i32
    %c0_i32_1 = arith.constant 0 : i32
    return %arg1, %c0_i32, %arg0, %c0_i32_0 : i32, i32, i32, i32
  }
  func.func @transform_1(%arg0: i32, %arg1: i32) -> (i32, i32, i32) {
    %c0_i32 = arith.constant 0 : i32
    %c0_i32_0 = arith.constant 0 : i32
    return %arg1, %arg0, %c0_i32 : i32, i32, i32
  }
  func.func @transform_2(%arg0: i32, %arg1: i32) -> (i32, i32) {
    %c0_i32 = arith.constant 0 : i32
    %c0_i32_0 = arith.constant 0 : i32
    %c0_i32_1 = arith.constant 0 : i32
    return %c0_i32, %c0_i32_0 : i32, i32
  }
  func.func @transform_3(%arg0: i32, %arg1: i32) -> (i32, i32, i32) {
    %c0_i32 = arith.constant 0 : i32
    %c0_i32_0 = arith.constant 0 : i32
    return %arg1, %arg0, %c0_i32 : i32, i32, i32
  }
}

</mosaic_0001>

<bundles_post_ra>
// kernel: tpu_custom_call.1
= control target key start
LH: loop header
LB: loop body
LE: loop exit
PB: predicated region body
PF: predicated region fallthrough
CT: control target
= control target key end

     0   :  { %8 = vsyncpa [#allocation5], 0  ;;  %s1906_s0 = inlined_call_operand.vmem [shape: f32[8,2,2,1], index: 0, kind: input, shape index: {}]   ;;  %s1907_s1 = inlined_call_operand.hbm [shape: f32[8,2,128], index: 1, kind: input, shape index: {}]   ;;  %s1908_s2 = inlined_call_operand.vmem [shape: f32[32,128], index: 2, kind: input, shape index: {}]   ;;  %s1909_s3 = inlined_call_operand.hbm [shape: f32[8,2,32], index: 3, kind: output, shape index: {}]  }
   0x1   :  { %10 = vsyncpa [#allocation5 + $0x1], 0 }
   0x2   :  { %11 = vsyncpa [#allocation6], 0 }
   0x3   :  { %13 = vsyncpa [#allocation6 + $0x1], 0  ;;  %s1571_s12 = smov 0   ;;  %s1573_s13 = smov 0  }
   0x4   :  { %s1575_s14 = smov 0   ;;  %s1577_s15 = smov 0  }
   0x5   :  { %s1579_s16 = smov 0   ;;  %s1581_s17 = smov 0  }
   0x6 LB: > { %s1125_s18 = sadd.s32 4294967295, %s1536_s17   ;;  %s1126_s19 = sadd.s32 4294967294, %s1536_s17   ;;  %s1536_s17 = sphi %s1581_s17, %s19_s17   ;;  %s1532_s16 = sphi %s1579_s16, %s1941_s16   ;;  %s1528_s15 = sphi %s1577_s15, %s1940_s15   ;;  %s1524_s14 = sphi %s1575_s14, %s1939_s14   ;;  %s1520_s13 = sphi %s1573_s13, %s1938_s13   ;;  %s1516_s12 = sphi %s1571_s12, %s1937_s12  }
   0x7   : > { %s28_s20 = sadd.s32 1, %s1532_s16  ;;  %s68_s21 = sadd.s32 1, %s1524_s14 }
   0x8   : > { %p29_p0 = scmp.ge.s32.totalorder %s28_s20, 2  ;;  %p75_p1 = scmp.ne.s32.totalorder %s1524_s14, %s1520_s13 }
   0x9   : > { %p76_p2 = scmp.eq.s32.totalorder %s1536_s17, 0  ;;  %p81_p3 = scmp.ne.s32.totalorder %s1520_s13, %s1516_s12 }
   0xa   : > { %s1943_s20 = smov (%p29_p0, %s28_s20), 0  ;;  %p82_p5 = scmp.eq.s32.totalorder %s1125_s18, 0 }
   0xb   : > { %p1612_p4 = por %p76_p2, %p75_p1  ;;  %s63_s23 = ssub.s32 %s1532_s16, %s1943_s20 }
   0xc   : > { %p128_p6 = scmp.eq.s32.totalorder %s1125_s18, 1  ;;  %p66_p7 = scmp.eq.s32.totalorder %s63_s23, 0 }
   0xd   : > { %p1618_p8 = por %p82_p5, %p81_p3  ;;  %p134_p10 = scmp.eq.s32.totalorder %s1126_s19, 1 }
   0xe   : > { %p1622_p9 = por %p128_p6, %p75_p1  ;;  %p1329_p13 = scmp.lt.s32.totalorder %s1536_s17, 2 }
   0xf   : > { %s1627_s26 = scalar_select %p66_p7, %s1524_s14, %s68_s21  }
  0x10   : > { %s1923_s25 = scalar_select %p1622_p9, 1, 0 }
  0x11   : > { %p1629_p11 = por %p134_p10, %p81_p3  ;;  %s170_s28 = sand.u32 1, %s1524_s14  }
  0x12   : > { %s1129_s29 = sshll.u32 %s170_s28, 3  ;;  %s1226_s30 = sshll.u32 %s1532_s16, 7 }
  0x13   : > { %s1924_s27 = scalar_select %p1629_p11, 1, 0 }
  0x14   : > { %s1640_s6 = scalar_lea.hbm %s1907_s1, %s1226_s30  ;;  %s174_s7 = scalar_lea.vmem [#allocation4], %s1129_s29 }
  0x15   : > { %s182_s8 = sshll.u32 %s174_s7, 4  ;;  %p1646_p0 = pnand %p1329_p13, %p1612_p4  ;;  %s1642_s8 = int_to_ptr.vmem [resolvable:$true] %s182_s8 }
  0x16   : > { %s1651_s10 = scalar_lea.sflag [#allocation5], %s170_s28  ;;  %s1424_s11 = scalar_lea.hbm %s1640_s6, 128 }
  0x17   : > { %p1425_p2 = scmp.ne.s32.totalorder %s1640_s6, %s1424_s11  ;;  %p1426_p3 = pneg %p1646_p0 }
  0x18   : > { %s1429_s21 = scalar_lea.hbm %s1907_s1, 256  ;;  %p1430_p4 = scmp.lt.u32.totalorder %s1640_s6, %s1907_s1 }
  0x19   : > { %p1427_p5 = pnand %p1426_p3, %p1425_p2  ;;  %p1431_p7 = scmp.lt.u32.totalorder %s1429_s21, %s1424_s11 }
  0x1a   : > { %p1433_p13 = scmp.lt.u32.totalorder %s1424_s11, %s1640_s6 }
  0x1b   : > { %p1428_p6 = pneg %p1427_p5  ;;  %p1432_p10 = por %p1431_p7, %p1430_p4 }
  0x1d   : > { %p1434_p12 = por %p1433_p13, %p1432_p10 }
  0x1f   : > { %p1435_p1 = pnand %p1434_p12, %p1428_p6 }
  0x21   : > { %1438 = shalt.err (!%p1435_p1)
}
  0x22   : > { %s1439_s28 = scalar_lea.vmem %s1642_s8, 128  ;;  %s1538_s29 = smov [#allocation4]  }
  0x23   : > { %p1440_p2 = scmp.ne.s32.totalorder %s1642_s8, %s1439_s28  ;;  %s1444_s30 = sshll.u32 %s1538_s29, 4  ;;  %s1445_s30 = int_to_ptr.vmem [resolvable:$false] %s1444_s30 }
  0x24   : > { %s1446_s4 = scalar_lea.vmem %s1445_s30, 256  ;;  %p1447_p9 = scmp.lt.s32.totalorder %s1642_s8, %s1445_s30 }
  0x25   : > { %p1442_p5 = pnand %p1440_p2, %p1426_p3  ;;  %p1448_p4 = scmp.lt.s32.totalorder %s1446_s4, %s1439_s28 }
  0x27   : > { %p1443_p11 = pneg %p1442_p5  ;;  %p1449_p7 = por %p1448_p4, %p1447_p9 }
  0x29   : > { %p1450_p10 = pnand %p1449_p7, %p1443_p11 }
  0x2b   : > { %1453 = shalt.err (!%p1450_p10)
}
  0x2c   : > { %s1539_s5 = smov 32   ;;  %s1540_s7 = smov 2  }
  0x2d   : > { %1324 = dma.hbm_to_vmem [thread:$0]  (!%p1646_p0), %s1640_s6, 128, %s1642_s8, %s1651_s10, %s1539_s5, %s1539_s5, %s1540_s7  }
  0x2e   : > { %p190_p12 = scmp.lt.s32.totalorder %s1536_s17, 3  ;;  %p1926_p1 = scmp.ge.s32.totalorder %s1536_s17, 1 }
  0x30   : > { %p191_p3 = pnand %p1926_p1, %p190_p12 }
  0x31   : > { %s1683_s11 = sand.u32 (!%p191_p3), 1, %s1520_s13  }
  0x32   : > { %194 = sbr.rel (%p191_p3) target bundleno = 3093 (0xc15), region = 32  ;;  %s1133_s18 = sshll.u32 (!%p191_p3), %s1683_s11, 3 }
  0x33   : > { %s197_s19 = scalar_lea.sflag (!%p191_p3), [#allocation5], %s1683_s11  ;;  %s1687_s21 = scalar_lea.vmem (!%p191_p3), [#allocation4], %s1133_s18 }
  0x39   : > { %1507 = dma.done.wait (%p1618_p8), %s197_s19, 128  }
  0x3a   : > { %1509 = vsyncadd (%p1618_p8), %s197_s19, 4294967168  ;;  %s1694_s6 = sshll.u32 %s1528_s15, 2  ;;  %s1703_s28 = scalar_lea.vmem [#allocation7], %s1133_s18 }
  0x3b   : > { %p233_p9 = scmp.lt.s32.totalorder %s1694_s6, 7  ;;  %p1138_p11 = scmp.ne.s32.totalorder %s1528_s15, 0 }
  0x3c   : > { %vm248_vm0 = vcmask (!%p1138_p11), 254976   ;;  %v1541_v0 = vmov (!%p1138_p11), 0.0  }
  0x3d   : > { %s234_s8 = scalar_select %p233_p9, %s1694_s6, 7 }
  0x3e   : > { %247 = sbr.rel (%p1138_p11) target bundleno = 69 (0x45), region = 40  ;;  %249 = vst.msk [vmem:[#allocation2] sm:$0x3] (!%p1138_p11), %vm248_vm0, %v1541_v0  ;;  %250 = vst.msk [vmem:[#allocation2 + $0x2] sm:$0x3] (!%p1138_p11), %vm248_vm0, %v1541_v0 }
  0x3f   : > { %s1227_s9 = sshll.u32 %s234_s8, 2  ;;  %251 = vst.msk [vmem:[#allocation3] sm:$0x3] (!%p1138_p11), %vm248_vm0, %v1541_v0  ;;  %252 = vst.msk [vmem:[#allocation3 + $0x2] sm:$0x3] (!%p1138_p11), %vm248_vm0, %v1541_v0 }
  0x40   : > { %s1701_s23 = scalar_lea.vmem %s1906_s0, %s1227_s9 }
  0x45 PF: > { %v258_v1 = vld [vmem:[%s1701_s23] sm:$0x3]  ;;  %v1542_v2 = vmov 0   ;;  %v254_v4 = vld [vmem:[%s1908_s2 + $0x8] sm:$0xff]  ;;  %v1543_v5 = vmov 0.0|0.0   ;;  %v255_v8 = vld [vmem:[%s1908_s2 + $0x10] sm:$0xff] }
  0x46   : > { %1390 = vset.pattern.permute.xlu0 %v1542_v2  ;;  %v253_v3 = vld [vmem:[%s1908_s2] sm:$0xff]  ;;  %1391 = vset.pattern.permute.xlu1 %v1542_v2  ;;  %v256_v9 = vld [vmem:[%s1908_s2 + $0x18] sm:$0xff]  ;;  %vm1544_vm1 = vmmov 0   ;;  %v1545_v11 = vmov 0.0   ;;  %s260_s8 = sadd.s32 4294967295, %s1694_s6  ;;  %s289_s9 = sadd.s32 4294967294, %s1694_s6 }
  0x47   : > { %280 = vperm.xlu0 %1390, %v258_v1   ;;  %1293 = vmatprep.subr.bf16.mxu0 %v1543_v5  ;;  %v1714_v6 = vpack.c.bf16 %v254_v4, %v253_v3  ;;  %v259_v7 = vld [vmem:[%s1701_s23 + $0x2] sm:$0x3]  ;;  %v1727_v10 = vpack.c.bf16 %v256_v9, %v255_v8  ;;  %p261_p8 = scmp.gt.s32.totalorder %s260_s8, 0  ;;  %p290_p0 = scmp.gt.s32.totalorder %s289_s9, 0  ;;  %vm319_vm2 = vcmask 261120   ;;  %vm426_vm3 = vcmask 254976  }
  0x48   : > { %1299 = vmatprep.subr.bf16.mxu1 %v1543_v5  ;;  %1257 = vmatprep.mubr.msk.f32.mxu0 %vm1544_vm1, %v1545_v11  ;;  %v318_v19 = vld [vmem:[%s1687_s21] sm:$0x3]  ;;  %s1913_s18 = smov 64   ;;  %s1919_s19 = smov 32   ;;  %v1164_v40 = vld [vmem:[%s1701_s23 + $0x4] sm:$0x3] }
  0x49   : > { %1295 = vmatpush3.bf16.msra.mxu0 %v1714_v6  ;;  %1301 = vmatpush3.bf16.msra.mxu1 %v1714_v6  ;;  %s1945_s8 = smov (!%p261_p8, %s260_s8), 0  ;;  %s1947_s9 = smov (!%p290_p0, %s289_s9), 0  ;;  %v1165_v43 = vld [vmem:[%s1701_s23 + $0x6] sm:$0x3]  ;;  %v1175_v58 = vld [vmem:[%s1687_s21 + $0x2] sm:$0x3] }
  0x4a   : > { %1296 = vmatprep.subr.bf16.mxu0 %v1543_v5  ;;  %1302 = vmatprep.subr.bf16.mxu1 %v1543_v5  ;;  %s266_s10 = sand.u32 1, %s1945_s8   ;;  %s295_s22 = sand.u32 1, %s1947_s9  }
  0x4b   : > { %309 = vperm.xlu0 %1390, %v259_v7   ;;  %1268 = vmatprep.mubr.msk.f32.mxu1 %vm1544_vm1, %v1545_v11  ;;  %s1740_s24 = sshll.u32 %s266_s10, 1  ;;  %s1157_s29 = sshll.u32 %s295_s22, 1 }
  0x4c   : > { %s276_s30 = scalar_lea.vmem [#allocation2], %s1740_s24  ;;  %s305_s4 = scalar_lea.vmem [#allocation2], %s1157_s29 }
  0x4d   : > { %1298 = vmatpush3.bf16.msra.mxu0 %v1727_v10  ;;  %1304 = vmatpush3.bf16.msra.mxu1 %v1727_v10  ;;  %v277_v13 = vld [vmem:[%s276_s30] sm:$0x3]  ;;  %s314_s5 = scalar_lea.vmem [#allocation3], %s1157_s29  ;;  %s285_s7 = scalar_lea.vmem [#allocation3], %s1740_s24 }
  0x4e   : > { %1305 = vmatprep.subr.bf16.mxu0 %v1543_v5  ;;  %1311 = vmatprep.subr.bf16.mxu1 %v1543_v5  ;;  %v306_v14 = vld [vmem:[%s305_s4] sm:$0x3]  ;;  %v315_v23 = vld [vmem:[%s314_s5] sm:$0x3]  ;;  %s1911_s8 = smov 96   ;;  %s429_s9 = ssub.s32 0, %s1694_s6 }
  0x4f   : > { %v286_v24 = vld [vmem:[%s285_s7] sm:$0x3]  ;;  %s1160_s10 = smin.u32 %s1694_s6, %s429_s9  ;;  %p428_p6 = scmp.lt.s32.totalorder %s1694_s6, 0 }
  0x50   : > { %s431_s22 = sand.u32 1, %s1160_s10   ;;  %p453_p2 = scmp.gt.s32.totalorder %s1694_s6, 0 }
  0x51   : > { %s432_s29 = ssub.s32 0, %s431_s22  ;;  %s1927_s24 = smov 64  }
  0x52   : > { %s1949_s29 = smov (!%p428_p6, %s432_s29), %s431_s22  ;;  %p1934_p8 = scmp.ne.s32.totalorder %s1923_s25, 0 }
  0x53   : > { %p1162_p13 = scmp.lt.s32.totalorder %s1949_s29, 0  ;;  %s438_s4 = sadd.s32 2, %s1949_s29 }
  0x54   : > { %s454_s10 = scalar_select %p453_p2, %s1694_s6, 0 }
  0x55   : > { %s1951_s4 = smov (!%p1162_p13, %s438_s4), %s1949_s29 }
  0x56   : > { %s1163_s5 = sshll.u32 %s1951_s4, 1 }
  0x57   : > { %s447_s9 = scalar_lea.vmem [#allocation3], %s1163_s5  ;;  %s441_s22 = scalar_lea.vmem [#allocation2], %s1163_s5 }
  0xc6   : > { %v281_v12 = vpop.permute.xlu0 %280 }
  0xc7   : > { %v283_v16 = vmul.f32 %v281_v12, %v277_v13  ;;  %v287_v27 = vmul.f32 %v286_v24, %v281_v12  ;;  %v1184_v13 = vld [vmem:[%s1701_s23 + $0xa] sm:$0x3] }
  0xca   : > { %v310_v15 = vpop.permute.xlu0 %309 }
  0xcb   : > { %v312_v17 = vmul.f32 %v310_v15, %v306_v14  ;;  %v316_v25 = vmul.f32 %v315_v23, %v310_v15 }
  0xcd   : > { %v313_v18 = vadd.f32 %v312_v17, %v283_v16  ;;  %v317_v28 = vadd.f32 %v316_v25, %v287_v27 }
  0xcf   : > { %1258 = vmatmul.mubr.msk.f32.vlgmr.msra.gmra.mrb[0].mxu0 %vm319_vm2, %v313_v18 }
  0xd0   : > { %1307 = vmatpush3.bf16.msra.mxu0 %v1714_v6  ;;  %1279 = vmatprep.mubr.msk.f32.mxu0 %vm1544_vm1, %v1545_v11 }
  0xd1   : > { %1308 = vmatprep.subr.bf16.mxu0 %v1543_v5 }
  0xd4   : > { %1310 = vmatpush3.bf16.msra.mxu0 %v1727_v10 }
 0x1a2   : > { %v389_v20 = vpop.f32.mrb[0].mxu0 }
 0x1a3   : > { %v393_v21 = vadd.f32 %v389_v20, %v318_v19  ;;  %v1259_v22 = vpop.f32.mrb[1].mxu0 }
 0x1a5   : > { %1392 = vtanh.f32 %v393_v21  ;;  %v1159_v29 = vmul.f32 -1.442695, %v393_v21 }
 0x1a7   : > { %1394 = vpow2.f32 %v1159_v29 }
 0x1af   : > { %v1393_v26 = vpop.eup %1392 }
 0x1b0   : > { %407 = vrot.lane.b32.xlu1 %v1393_v26, %s1913_s18 }
 0x1b1   : > { %v1395_v30 = vpop.eup %1394 }
 0x1b2   : > { %v397_v31 = vadd.f32 1.0, %v1395_v30 }
 0x1b4   : > { %402 = vrot.lane.b32.xlu1 %v317_v28, %s1919_s19  ;;  %1396 = vrcp.f32 %v397_v31  ;;  %v1194_v28 = vld [vmem:[%s1687_s21 + $0x4] sm:$0x3] }
 0x1be   : > { %v1397_v32 = vpop.eup %1396 }
 0x222   : > { %v408_v33 = vpop.permute.xlu1 %407 }
 0x223   : > { %v410_v34 = vmul.f32 %v1397_v32, %v408_v33 }
 0x225   : > { %412 = vrot.lane.b32.xlu0 %v410_v34, %s1919_s19 }
 0x226   : > { %v403_v35 = vpop.permute.xlu1 %402 }
 0x227   : > { %v405_v36 = vmul.f32 %v1397_v32, %v403_v35 }
 0x297   : > { %v413_v37 = vpop.permute.xlu0 %412 }
 0x298   : > { %v415_v38 = vadd.f32 %v413_v37, %v405_v36 }
 0x29a   : > { %1398 = vtanh.f32 %v415_v38 }
 0x2a4   : > { %v1399_v39 = vpop.eup %1398 }
 0x2a5   : > { %418 = vrot.lane.b32.xlu1 %v1399_v39, %s1913_s18 }
 0x2a9   : > { %472 = vperm.xlu1 %1391, %v1164_v40  }
 0x2ad   : > { %444 = vrot.lane.b32.xlu1 %v415_v38, %s1911_s8  ;;  %s458_s8 = sand.u32 1, %s454_s10  }
 0x2ae   : > { %s1772_s18 = sshll.u32 %s458_s8, 1 }
 0x2af   : > { %s1916_s29 = scalar_lea.vmem [#allocation2], %s1772_s18  ;;  %s1915_s4 = scalar_lea.vmem [#allocation3], %s1772_s18 }
 0x317   : > { %v419_v41 = vpop.permute.xlu1 %418 }
 0x318   : > { %v421_v42 = vmul.f32 %v1397_v32, %v419_v41 }
 0x31a   : > { %423 = vrot.lane.b32.xlu0 %v421_v42, %s1919_s19 }
 0x31e   : > { %484 = vperm.xlu0 %1390, %v1165_v43  }
 0x328   : > { %v473_v44 = vpop.permute.xlu1 %472 }
 0x32c   : > { %v445_v45 = vpop.permute.xlu1 %444 }
 0x32d   : > { %448 = vst.msk [vmem:[%s447_s9] sm:$0x3] %vm426_vm3, %v445_v45 }
 0x334   : > { %v478_v48 = vld [vmem:[%s1915_s4] sm:$0x3] }
 0x335   : > { %v489_v51 = vld [vmem:[%s285_s7] sm:$0x3]  ;;  %v479_v53 = vmul.f32 %v478_v48, %v473_v44  ;;  %s449_s7 = sadd.s32 1, %s1694_s6 }
 0x336   : > { %s603_s8 = ssub.s32 0, %s449_s7  ;;  %p602_p5 = scmp.lt.s32.totalorder %s449_s7, 0 }
 0x337   : > { %s1179_s5 = smin.u32 %s603_s8, %s449_s7  ;;  %p627_p7 = scmp.gt.s32.totalorder %s449_s7, 0 }
 0x338   : > { %s605_s9 = sand.u32 1, %s1179_s5  }
 0x339   : > { %s606_s10 = ssub.s32 0, %s605_s9  ;;  %s1957_s7 = smov (!%p627_p7, %s449_s7), 0 }
 0x33a   : > { %s1953_s10 = smov (!%p602_p5, %s606_s10), %s605_s9  ;;  %s632_s8 = sand.u32 1, %s1957_s7  }
 0x33b   : > { %p1181_p4 = scmp.lt.s32.totalorder %s1953_s10, 0  ;;  %s1804_s9 = sshll.u32 %s632_s8, 1 }
 0x33c   : > { %s1929_s7 = scalar_lea.vmem [#allocation2], %s1772_s18 }
 0x38c   : > { %v424_v46 = vpop.permute.xlu0 %423 }
 0x38d   : > { %427 = vst.msk [vmem:[%s1703_s28] sm:$0x3] %vm426_vm3, %v424_v46  ;;  %442 = vst.msk [vmem:[%s441_s22] sm:$0x3] %vm426_vm3, %v424_v46  ;;  %s612_s22 = sadd.s32 2, %s1953_s10 }
 0x38e   : > { %s1955_s22 = smov (!%p1181_p4, %s612_s22), %s1953_s10  ;;  %s1918_s10 = scalar_lea.vmem [#allocation2], %s1804_s9 }
 0x38f   : > { %s1182_s4 = sshll.u32 %s1955_s22, 1  ;;  %s1930_s22 = scalar_lea.vmem [#allocation3], %s1772_s18 }
 0x390   : > { %s615_s5 = scalar_lea.vmem [#allocation2], %s1182_s4  ;;  %s623_s18 = sadd.s32 2, %s1694_s6 }
 0x391   : > { %p776_p10 = scmp.lt.s32.totalorder %s623_s18, 0  ;;  %p801_p1 = scmp.gt.s32.totalorder %s623_s18, 0 }
 0x394   : > { %v469_v47 = vld [vmem:[%s1916_s29] sm:$0x3]  ;;  %s621_s29 = scalar_lea.vmem [#allocation3], %s1182_s4  ;;  %s777_s4 = ssub.s32 0, %s623_s18 }
 0x395   : > { %v481_v49 = vld [vmem:[%s276_s30] sm:$0x3]  ;;  %v475_v52 = vmul.f32 %v473_v44, %v469_v47  ;;  %s1928_s30 = smov 96   ;;  %v1202_v44 = vld [vmem:[%s1701_s23 + $0xc] sm:$0x3]  ;;  %s1198_s8 = smin.u32 %s777_s4, %s623_s18 }
 0x396   : > { %v1203_v47 = vld [vmem:[%s1701_s23 + $0xe] sm:$0x3]  ;;  %s1963_s18 = smov (!%p801_p1, %s623_s18), 0 }
 0x397   : > { %s806_s4 = sand.u32 1, %s1963_s18  }
 0x39d   : > { %v485_v50 = vpop.permute.xlu0 %484 }
 0x39e   : > { %v487_v54 = vmul.f32 %v485_v50, %v481_v49  ;;  %v490_v55 = vmul.f32 %v489_v51, %v485_v50 }
 0x3a0   : > { %v488_v56 = vadd.f32 %v487_v54, %v475_v52  ;;  %v491_v57 = vadd.f32 %v490_v55, %v479_v53 }
 0x3a2   : > { %1269 = vmatmul.mubr.msk.f32.vlgmr.msra.gmra.mrb[0].mxu1 %vm319_vm2, %v488_v56  ;;  %576 = vrot.lane.b32.xlu1 %v491_v57, %s1919_s19 }
 0x3a3   : > { %1313 = vmatpush3.bf16.msra.mxu1 %v1714_v6  ;;  %1290 = vmatprep.mubr.msk.f32.mxu1 %vm1544_vm1, %v1545_v11 }
 0x3a4   : > { %1314 = vmatprep.subr.bf16.mxu1 %v1543_v5 }
 0x3a7   : > { %1316 = vmatpush3.bf16.msra.mxu1 %v1727_v10  ;;  %v1183_v10 = vld [vmem:[%s1701_s23 + $0x8] sm:$0x3] }
 0x414   : > { %v577_v5 = vpop.permute.xlu1 %576 }
 0x475   : > { %v563_v59 = vpop.f32.mrb[0].mxu1 }
 0x476   : > { %v567_v60 = vadd.f32 %v1175_v58, %v563_v59  ;;  %v1270_v61 = vpop.f32.mrb[1].mxu1 }
 0x478   : > { %1400 = vtanh.f32 %v567_v60  ;;  %v1177_v63 = vmul.f32 -1.442695, %v567_v60 }
 0x47a   : > { %1402 = vpow2.f32 %v1177_v63 }
 0x482   : > { %v1401_v62 = vpop.eup %1400 }
 0x483   : > { %581 = vrot.lane.b32.xlu0 %v1401_v62, %s1927_s24  ;;  %v1213_v62 = vld [vmem:[%s1687_s21 + $0x6] sm:$0x3]  ;;  %s797_s21 = sadd.s32 3, %s1694_s6 }
 0x484   : > { %v1403_v0 = vpop.eup %1402  ;;  %p950_p3 = scmp.lt.s32.totalorder %s797_s21, 0 }
 0x485   : > { %v571_v1 = vadd.f32 1.0, %v1403_v0 }
 0x487   : > { %1404 = vrcp.f32 %v571_v1 }
 0x491   : > { %v1405_v2 = vpop.eup %1404 }
 0x492   : > { %v579_v6 = vmul.f32 %v1405_v2, %v577_v5 }
 0x4f5   : > { %v582_v3 = vpop.permute.xlu0 %581 }
 0x4f6   : > { %v584_v4 = vmul.f32 %v1405_v2, %v582_v3 }
 0x4f8   : > { %586 = vrot.lane.b32.xlu0 %v584_v4, %s1919_s19 }
 0x56a   : > { %v587_v7 = vpop.permute.xlu0 %586 }
 0x56b   : > { %v589_v8 = vadd.f32 %v587_v7, %v579_v6 }
 0x56d   : > { %1406 = vtanh.f32 %v589_v8 }
 0x577   : > { %v1407_v9 = vpop.eup %1406 }
 0x578   : > { %592 = vrot.lane.b32.xlu1 %v1407_v9, %s1927_s24 }
 0x57c   : > { %646 = vperm.xlu1 %1391, %v1183_v10  }
 0x580   : > { %618 = vrot.lane.b32.xlu1 %v589_v8, %s1928_s30 }
 0x5ea   : > { %v593_v11 = vpop.permute.xlu1 %592 }
 0x5eb   : > { %v595_v12 = vmul.f32 %v1405_v2, %v593_v11 }
 0x5ed   : > { %597 = vrot.lane.b32.xlu0 %v595_v12, %s1919_s19 }
 0x5f1   : > { %658 = vperm.xlu0 %1390, %v1184_v13  }
 0x5fb   : > { %v647_v14 = vpop.permute.xlu1 %646 }
 0x5ff   : > { %v619_v15 = vpop.permute.xlu1 %618 }
 0x600   : > { %622 = vst.msk [vmem:[%s621_s29] sm:$0x3] %vm426_vm3, %v619_v15  ;;  %s1917_s29 = scalar_lea.vmem [#allocation3], %s1804_s9 }
 0x607   : > { %v652_v18 = vld [vmem:[%s1917_s29] sm:$0x3] }
 0x608   : > { %v663_v21 = vld [vmem:[%s1930_s22] sm:$0x3]  ;;  %v653_v23 = vmul.f32 %v652_v18, %v647_v14 }
 0x65f   : > { %v598_v16 = vpop.permute.xlu0 %597 }
 0x660   : > { %1178 = vst.msk [vmem:[%s1703_s28 + $0x2] sm:$0x3] %vm426_vm3, %v598_v16  ;;  %616 = vst.msk [vmem:[%s615_s5] sm:$0x3] %vm426_vm3, %v598_v16  ;;  %s779_s5 = sand.u32 1, %s1198_s8   ;;  %s1212_s8 = sshll.u32 %s806_s4, 1 }
 0x667   : > { %v643_v17 = vld [vmem:[%s1918_s10] sm:$0x3] }
 0x668   : > { %v655_v19 = vld [vmem:[%s1929_s7] sm:$0x3]  ;;  %v649_v22 = vmul.f32 %v647_v14, %v643_v17  ;;  %s780_s7 = ssub.s32 0, %s779_s5 }
 0x669   : > { %s1959_s7 = smov (!%p776_p10, %s780_s7), %s779_s5  ;;  %s816_s5 = scalar_lea.vmem [#allocation2], %s1212_s8 }
 0x66a   : > { %p1200_p12 = scmp.lt.s32.totalorder %s1959_s7, 0  ;;  %s786_s22 = sadd.s32 2, %s1959_s7 }
 0x66c   : > { %s1961_s22 = smov (!%p1200_p12, %s786_s22), %s1959_s7  ;;  %s825_s7 = scalar_lea.vmem [#allocation3], %s1212_s8 }
 0x66d   : > { %s1201_s29 = sshll.u32 %s1961_s22, 1  ;;  %s1931_s22 = scalar_lea.vmem [#allocation2], %s1804_s9 }
 0x66e   : > { %s795_s10 = scalar_lea.vmem [#allocation3], %s1201_s29  ;;  %s789_s23 = scalar_lea.vmem [#allocation2], %s1201_s29 }
 0x670   : > { %v659_v20 = vpop.permute.xlu0 %658 }
 0x671   : > { %v661_v24 = vmul.f32 %v659_v20, %v655_v19  ;;  %v664_v25 = vmul.f32 %v663_v21, %v659_v20 }
 0x673   : > { %v662_v26 = vadd.f32 %v661_v24, %v649_v22  ;;  %v665_v27 = vadd.f32 %v664_v25, %v653_v23 }
 0x675   : > { %1280 = vmatmul.mubr.msk.f32.vlgmr.msra.gmra.mrb[2].mxu0 %vm319_vm2, %v662_v26  ;;  %750 = vrot.lane.b32.xlu1 %v665_v27, %s1919_s19 }
 0x6e7   : > { %v751_v39 = vpop.permute.xlu1 %750 }
 0x748   : > { %v737_v29 = vpop.f32.mrb[2].mxu0 }
 0x749   : > { %v741_v30 = vadd.f32 %v1194_v28, %v737_v29  ;;  %v1281_v31 = vpop.f32.mrb[3].mxu0 }
 0x74b   : > { %1408 = vtanh.f32 %v741_v30  ;;  %v1196_v33 = vmul.f32 -1.442695, %v741_v30 }
 0x74d   : > { %1410 = vpow2.f32 %v1196_v33 }
 0x755   : > { %v1409_v32 = vpop.eup %1408 }
 0x756   : > { %755 = vrot.lane.b32.xlu0 %v1409_v32, %s1927_s24 }
 0x757   : > { %v1411_v34 = vpop.eup %1410 }
 0x758   : > { %v745_v35 = vadd.f32 1.0, %v1411_v34 }
 0x75a   : > { %1412 = vrcp.f32 %v745_v35 }
 0x764   : > { %v1413_v36 = vpop.eup %1412 }
 0x765   : > { %v753_v40 = vmul.f32 %v1413_v36, %v751_v39 }
 0x7c8   : > { %v756_v37 = vpop.permute.xlu0 %755 }
 0x7c9   : > { %v758_v38 = vmul.f32 %v1413_v36, %v756_v37 }
 0x7cb   : > { %760 = vrot.lane.b32.xlu0 %v758_v38, %s1919_s19 }
 0x83d   : > { %v761_v41 = vpop.permute.xlu0 %760 }
 0x83e   : > { %v763_v42 = vadd.f32 %v761_v41, %v753_v40 }
 0x840   : > { %1414 = vtanh.f32 %v763_v42 }
 0x84a   : > { %v1415_v43 = vpop.eup %1414 }
 0x84b   : > { %766 = vrot.lane.b32.xlu1 %v1415_v43, %s1927_s24 }
 0x84f   : > { %820 = vperm.xlu1 %1391, %v1202_v44  }
 0x853   : > { %792 = vrot.lane.b32.xlu1 %v763_v42, %s1928_s30 }
 0x8bd   : > { %v767_v45 = vpop.permute.xlu1 %766 }
 0x8be   : > { %v769_v46 = vmul.f32 %v1413_v36, %v767_v45 }
 0x8c0   : > { %771 = vrot.lane.b32.xlu0 %v769_v46, %s1919_s19  ;;  %s1932_s19 = scalar_lea.vmem [#allocation3], %s1804_s9 }
 0x8c4   : > { %832 = vperm.xlu0 %1390, %v1203_v47  }
 0x8ce   : > { %v821_v48 = vpop.permute.xlu1 %820 }
 0x8d2   : > { %v793_v49 = vpop.permute.xlu1 %792 }
 0x8d3   : > { %796 = vst.msk [vmem:[%s795_s10] sm:$0x3] %vm426_vm3, %v793_v49  ;;  %s1933_s10 = smov 32  }
 0x8da   : > { %v826_v52 = vld [vmem:[%s825_s7] sm:$0x3] }
 0x8db   : > { %v837_v55 = vld [vmem:[%s1932_s19] sm:$0x3]  ;;  %v827_v57 = vmul.f32 %v826_v52, %v821_v48  ;;  %s951_s19 = ssub.s32 0, %s797_s21 }
 0x8dc   : > { %s1217_s9 = smin.u32 %s951_s19, %s797_s21  ;;  %s972_s21 = scalar_lea.sflag [#allocation6], %s1683_s11 }
 0x8dd   : > { %s953_s29 = sand.u32 1, %s1217_s9  }
 0x8de   : > { %s954_s18 = ssub.s32 0, %s953_s29 }
 0x8df   : > { %s1965_s18 = smov (!%p950_p3, %s954_s18), %s953_s29 }
 0x8e0   : > { %p1219_p9 = scmp.lt.s32.totalorder %s1965_s18, 0  ;;  %s960_s4 = sadd.s32 2, %s1965_s18 }
 0x8e2   : > { %s1967_s4 = smov (!%p1219_p9, %s960_s4), %s1965_s18 }
 0x932   : > { %v772_v50 = vpop.permute.xlu0 %771 }
 0x933   : > { %1197 = vst.msk [vmem:[%s1703_s28 + $0x4] sm:$0x3] %vm426_vm3, %v772_v50  ;;  %790 = vst.msk [vmem:[%s789_s23] sm:$0x3] %vm426_vm3, %v772_v50  ;;  %s1220_s23 = sshll.u32 %s1967_s4, 1 }
 0x934   : > { %s969_s6 = scalar_lea.vmem [#allocation3], %s1220_s23 }
 0x93a   : > { %v817_v51 = vld [vmem:[%s816_s5] sm:$0x3] }
 0x93b   : > { %v829_v53 = vld [vmem:[%s1931_s22] sm:$0x3]  ;;  %v823_v56 = vmul.f32 %v821_v48, %v817_v51  ;;  %s963_s22 = scalar_lea.vmem [#allocation2], %s1220_s23 }
 0x943   : > { %v833_v54 = vpop.permute.xlu0 %832 }
 0x944   : > { %v835_v58 = vmul.f32 %v833_v54, %v829_v53  ;;  %v838_v59 = vmul.f32 %v837_v55, %v833_v54 }
 0x946   : > { %v836_v60 = vadd.f32 %v835_v58, %v823_v56  ;;  %v839_v61 = vadd.f32 %v838_v59, %v827_v57 }
 0x948   : > { %1291 = vmatmul.mubr.msk.f32.vlgmr.msra.gmra.mrb[2].mxu1 %vm319_vm2, %v836_v60  ;;  %924 = vrot.lane.b32.xlu1 %v839_v61, %s1933_s10 }
 0x9ba   : > { %v925_v9 = vpop.permute.xlu1 %924 }
 0xa1b   : > { %v911_v63 = vpop.f32.mrb[2].mxu1 }
 0xa1c   : > { %v915_v0 = vadd.f32 %v1213_v62, %v911_v63  ;;  %v1292_v1 = vpop.f32.mrb[3].mxu1 }
 0xa1e   : > { %1416 = vtanh.f32 %v915_v0  ;;  %v1215_v3 = vmul.f32 -1.442695, %v915_v0 }
 0xa20   : > { %1418 = vpow2.f32 %v1215_v3 }
 0xa28   : > { %v1417_v2 = vpop.eup %1416 }
 0xa29   : > { %929 = vrot.lane.b32.xlu0 %v1417_v2, %s1927_s24 }
 0xa2a   : > { %v1419_v4 = vpop.eup %1418 }
 0xa2b   : > { %v919_v5 = vadd.f32 1.0, %v1419_v4 }
 0xa2d   : > { %1420 = vrcp.f32 %v919_v5 }
 0xa37   : > { %v1421_v6 = vpop.eup %1420 }
 0xa38   : > { %v927_v10 = vmul.f32 %v1421_v6, %v925_v9 }
 0xa9b   : > { %v930_v7 = vpop.permute.xlu0 %929 }
 0xa9c   : > { %v932_v8 = vmul.f32 %v1421_v6, %v930_v7 }
 0xa9e   : > { %934 = vrot.lane.b32.xlu0 %v932_v8, %s1933_s10 }
 0xb10   : > { %v935_v11 = vpop.permute.xlu0 %934 }
 0xb11   : > { %v937_v12 = vadd.f32 %v935_v11, %v927_v10 }
 0xb13   : > { %1422 = vtanh.f32 %v937_v12 }
 0xb1d   : > { %v1423_v13 = vpop.eup %1422 }
 0xb1e   : > { %940 = vrot.lane.b32.xlu1 %v1423_v13, %s1927_s24  ;;  %s1228_s24 = sshll.u32 %s1528_s15, 7  ;;  %s1549_s15 = smov [#allocation7]  }
 0xb1f   : > { %s1850_s7 = scalar_lea.hbm %s1909_s3, %s1228_s24  ;;  %s1458_s9 = sshll.u32 %s1549_s15, 4  ;;  %s1459_s9 = int_to_ptr.vmem [resolvable:$false] %s1458_s9 }
 0xb20   : > { %s1460_s29 = scalar_lea.vmem %s1459_s9, 256 }
 0xb22   : > { %966 = vrot.lane.b32.xlu1 %v937_v12, %s1928_s30  ;;  %s986_s30 = sshll.u32 %s1703_s28, 4  ;;  %s1852_s30 = int_to_ptr.vmem [resolvable:$true] %s986_s30 }
 0xb23   : > { %s1454_s19 = scalar_lea.vmem %s1852_s30, 128  ;;  %p1461_p13 = scmp.lt.s32.totalorder %s1852_s30, %s1459_s9 }
 0xb24   : > { %p1455_p11 = scmp.ne.s32.totalorder %s1852_s30, %s1454_s19  ;;  %p1462_p2 = scmp.lt.s32.totalorder %s1460_s29, %s1454_s19 }
 0xb26   : > { %p1456_p0 = pnand %p1455_p11, %p1934_p8  ;;  %p1463_p5 = por %p1462_p2, %p1461_p13 }
 0xb28   : > { %p1457_p6 = pneg %p1456_p0 }
 0xb2a   : > { %p1464_p4 = pnand %p1463_p5, %p1457_p6 }
 0xb90   : > { %v941_v14 = vpop.permute.xlu1 %940 }
 0xb91   : > { %v943_v15 = vmul.f32 %v1421_v6, %v941_v14 }
 0xb93   : > { %945 = vrot.lane.b32.xlu0 %v943_v15, %s1933_s10 }
 0xb94   : > { %v967_v16 = vpop.permute.xlu1 %966 }
 0xb95   : > { %970 = vst.msk [vmem:[%s969_s6] sm:$0x3] %vm426_vm3, %v967_v16 }
 0xc05   : > { %v946_v17 = vpop.permute.xlu0 %945 }
 0xc06   : > { %1216 = vst.msk [vmem:[%s1703_s28 + $0x6] sm:$0x3] %vm426_vm3, %v946_v17  ;;  %964 = vst.msk [vmem:[%s963_s22] sm:$0x3] %vm426_vm3, %v946_v17 }
 0xc07   : > { %1467 = shalt.err (!%p1464_p4)
}
 0xc08   : > { %s1468_s28 = scalar_lea.hbm %s1850_s7, 128  ;;  %s1472_s23 = scalar_lea.hbm %s1909_s3, 256 }
 0xc09   : > { %p1469_p7 = scmp.ne.s32.totalorder %s1850_s7, %s1468_s28  ;;  %p1473_p1 = scmp.lt.u32.totalorder %s1850_s7, %s1909_s3 }
 0xc0a   : > { %p1474_p3 = scmp.lt.u32.totalorder %s1472_s23, %s1468_s28  ;;  %p1476_p11 = scmp.lt.u32.totalorder %s1468_s28, %s1850_s7 }
 0xc0b   : > { %p1470_p10 = pnand %p1469_p7, %p1934_p8 }
 0xc0c   : > { %p1475_p9 = por %p1474_p3, %p1473_p1 }
 0xc0d   : > { %p1471_p12 = pneg %p1470_p10 }
 0xc0e   : > { %p1477_p0 = por %p1476_p11, %p1475_p9 }
 0xc10   : > { %p1478_p6 = pnand %p1477_p0, %p1471_p12 }
 0xc12   : > { %1481 = shalt.err (!%p1478_p6)
}
 0xc13   : > { %s1550_s8 = smov 2  }
 0xc14   : > { %1319 = dma.vmem_to_hbm [thread:$0]  (%p1934_p8), %s1852_s30, 128, %s1850_s7, %s972_s21, %s1933_s10, %s1933_s10, %s1550_s8  }
 0xc15 PF: > { %s1001_s5 = sand.u32 1, %s1516_s12   ;;  %p1935_p13 = scmp.ne.s32.totalorder %s1924_s27, 0 }
 0xc16   : > { %p1936_p2 = scmp.ge.s32.totalorder %s1536_s17, 2  ;;  %s1002_s22 = scalar_lea.sflag [#allocation6], %s1001_s5 }
 0xc18   : > { %p1326_p5 = pnand %p1936_p2, %p1935_p13 }
 0xc1a   : > { %1511 = dma.done.wait (!%p1326_p5), %s1002_s22, 128  }
 0xc1b   : > { %1513 = vsyncadd (!%p1326_p5), %s1002_s22, 4294967168  ;;  %s19_s17 = sadd.s32 1, %s1536_s17   ;;  %s1937_s12 = smov %s1520_s13 }
 0xc1c   : > { %p16_p4 = scmp.ge.s32.totalorder %s19_s17, 4   ;;  %s1938_s13 = smov %s1524_s14 }
 0xc1d   : > { %s1939_s14 = smov %s1627_s26  ;;  %s1940_s15 = smov %s1532_s16 }
 0xc1e   : > { %s1941_s16 = smov %s1943_s20  ;;  %18 = sbr.rel (!%p16_p4) target bundleno = 6 (0x6), region = 111 }
 0xc25   :  { %1007 = vsyncpa [#allocation5], 1 }
 0xc26   :  { %1009 = vsyncpa [#allocation5 + $0x1], 1 }
 0xc27   :  { %1010 = vsyncpa [#allocation6], 1 }
 0xc28   :  { %1012 = vsyncpa [#allocation6 + $0x1], 1 }

</bundles_post_ra>
